<compile_context>
chip_gen: v5e
topology: v5e:2x2
jax: 0.10.0
libtpu: 0.0.40
codegen_flags: <defaults>
</compile_context>

<pallas_src>
import functools
import math

import jax
import jax.numpy as jnp
from jax import lax
from jax.experimental import pallas as pl
from jax.experimental.pallas import tpu as pltpu


# ----------------------------------------------------------------------------
# In-kernel helpers
# ----------------------------------------------------------------------------

def _layernorm(x, gamma, beta, eps):
    mu = jnp.mean(x, axis=-1, keepdims=True)
    var = jnp.mean(jnp.square(x - mu), axis=-1, keepdims=True)
    return (x - mu) * lax.rsqrt(var + eps) * gamma + beta


# ----------------------------------------------------------------------------
# Fused multi-head attention sublayer:  LN(x + MHA(x_q, x_kv))
# ----------------------------------------------------------------------------

def _mha_ln_kernel(xq_ref, xkv_ref,
                   wq_ref, bq_ref, wk_ref, bk_ref, wv_ref, bv_ref,
                   wo_ref, bo_ref, g_ref, beta_ref, o_ref,
                   *, num_heads, causal, scale, eps):
    xq = xq_ref[...]                       # (Tq, D) f32
    xkv = xkv_ref[...]                     # (Tk, D) f32

    # QKV projections (keep all activations in VMEM).
    # TODO(synk): cast operands to bf16 for the MXU once D/T are non-trivial.
    q = jnp.dot(xq, wq_ref[...], preferred_element_type=jnp.float32) + bq_ref[...]
    k = jnp.dot(xkv, wk_ref[...], preferred_element_type=jnp.float32) + bk_ref[...]
    v = jnp.dot(xkv, wv_ref[...], preferred_element_type=jnp.float32) + bv_ref[...]

    D = q.shape[-1]
    dk = D // num_heads

    # Static (trace-time unrolled) loop over heads.
    head_outs = []
    for hi in range(num_heads):
        qh = q[:, hi * dk:(hi + 1) * dk]                   # (Tq, dk)
        kh = k[:, hi * dk:(hi + 1) * dk]                   # (Tk, dk)
        vh = v[:, hi * dk:(hi + 1) * dk]                   # (Tk, dk)
        s = jnp.dot(qh, kh.T, preferred_element_type=jnp.float32) * scale  # (Tq, Tk)
        if causal:
            row = lax.broadcasted_iota(jnp.int32, s.shape, 0)
            col = lax.broadcasted_iota(jnp.int32, s.shape, 1)
            s = jnp.where(col <= row, s, jnp.float32(-1e9))
        m = jnp.max(s, axis=-1, keepdims=True)
        p = jnp.exp(s - m)
        p = p * pl.reciprocal(jnp.sum(p, axis=-1, keepdims=True), approx=True)
        head_outs.append(jnp.dot(p, vh, preferred_element_type=jnp.float32))

    attn = jnp.concatenate(head_outs, axis=-1)             # (Tq, D)
    y = jnp.dot(attn, wo_ref[...], preferred_element_type=jnp.float32) + bo_ref[...]

    # Residual add + post-LN, fused into the epilogue.
    o_ref[...] = _layernorm(xq + y, g_ref[...], beta_ref[...], eps).astype(o_ref.dtype)


def pallas_mha_ln(q_in, kv_in, p, gamma, beta, B, Tq, Tk, num_heads,
                  causal, eps=1e-5):
    D = q_in.shape[-1]
    dk = D // num_heads
    kern = functools.partial(_mha_ln_kernel, num_heads=num_heads, causal=causal,
                             scale=1.0 / math.sqrt(dk), eps=eps)
    wspec = pl.BlockSpec((D, D), lambda b: (0, 0))
    vspec = pl.BlockSpec((1, D), lambda b: (0, 0))
    return pl.pallas_call(
        kern,
        out_shape=jax.ShapeDtypeStruct((B * Tq, D), q_in.dtype),
        grid=(B,),
        in_specs=[
            pl.BlockSpec((Tq, D), lambda b: (b, 0)),
            pl.BlockSpec((Tk, D), lambda b: (b, 0)),
            wspec, vspec, wspec, vspec, wspec, vspec,    # wq,bq, wk,bk, wv,bv
            wspec, vspec,                                # wo,bo
            vspec, vspec,                                # ln gamma, beta
        ],
        out_specs=pl.BlockSpec((Tq, D), lambda b: (b, 0)),
        compiler_params=pltpu.CompilerParams(dimension_semantics=("parallel",)),
    )(q_in, kv_in,
      p["wq"], p["bq"].reshape(1, D), p["wk"], p["bk"].reshape(1, D),
      p["wv"], p["bv"].reshape(1, D), p["wo"], p["bo"].reshape(1, D),
      gamma.reshape(1, D), beta.reshape(1, D))


# ----------------------------------------------------------------------------
# Fused FFN sublayer:  LN(x + W2(relu(W1 x + b1)) + b2)
# ----------------------------------------------------------------------------

def _ffn_ln_kernel(x_ref, w1_ref, b1_ref, w2_ref, b2_ref, g_ref, beta_ref, o_ref,
                   *, eps):
    x = x_ref[...]                                                   # (T, D)
    h = jnp.dot(x, w1_ref[...], preferred_element_type=jnp.float32) + b1_ref[...]
    h = jnp.maximum(h, 0.0)
    y = jnp.dot(h, w2_ref[...], preferred_element_type=jnp.float32) + b2_ref[...]
    o_ref[...] = _layernorm(x + y, g_ref[...], beta_ref[...], eps).astype(o_ref.dtype)


def pallas_ffn_ln(x, p, gamma, beta, B, T, eps=1e-5):
    D = x.shape[-1]
    F = p["w1"].shape[-1]
    kern = functools.partial(_ffn_ln_kernel, eps=eps)
    return pl.pallas_call(
        kern,
        out_shape=jax.ShapeDtypeStruct((B * T, D), x.dtype),
        grid=(B,),
        in_specs=[
            pl.BlockSpec((T, D), lambda b: (b, 0)),
            pl.BlockSpec((D, F), lambda b: (0, 0)),
            pl.BlockSpec((1, F), lambda b: (0, 0)),
            pl.BlockSpec((F, D), lambda b: (0, 0)),
            pl.BlockSpec((1, D), lambda b: (0, 0)),
            pl.BlockSpec((1, D), lambda b: (0, 0)),
            pl.BlockSpec((1, D), lambda b: (0, 0)),
        ],
        out_specs=pl.BlockSpec((T, D), lambda b: (b, 0)),
        compiler_params=pltpu.CompilerParams(dimension_semantics=("parallel",)),
    )(x, p["w1"], p["b1"].reshape(1, F), p["w2"], p["b2"].reshape(1, D),
      gamma.reshape(1, D), beta.reshape(1, D))


# ----------------------------------------------------------------------------
# Fused output head:  log_softmax(x @ W + b)
# ----------------------------------------------------------------------------

def _out_logsoftmax_kernel(x_ref, w_ref, b_ref, o_ref):
    x = x_ref[...]                                                   # (T, D)
    logits = jnp.dot(x, w_ref[...], preferred_element_type=jnp.float32) + b_ref[...]
    m = jnp.max(logits, axis=-1, keepdims=True)
    z = logits - m
    lse = jnp.log(jnp.sum(jnp.exp(z), axis=-1, keepdims=True))
    o_ref[...] = (z - lse).astype(o_ref.dtype)


def pallas_output_layer(x, w, b, B, T):
    # TODO(synk): for production vocab sizes (e.g. 32k) tile the V axis with an
    # online LSE so the (D, V) weight never exceeds the VMEM budget.
    D = x.shape[-1]
    V = w.shape[-1]
    return pl.pallas_call(
        _out_logsoftmax_kernel,
        out_shape=jax.ShapeDtypeStruct((B * T, V), x.dtype),
        grid=(B,),
        in_specs=[
            pl.BlockSpec((T, D), lambda b: (b, 0)),
            pl.BlockSpec((D, V), lambda b: (0, 0)),
            pl.BlockSpec((1, V), lambda b: (0, 0)),
        ],
        out_specs=pl.BlockSpec((T, V), lambda b: (b, 0)),
        compiler_params=pltpu.CompilerParams(dimension_semantics=("parallel",)),
    )(x, w, b.reshape(1, V))


# ----------------------------------------------------------------------------
# Model glue (plain JAX): embeddings, positional encoding
# ----------------------------------------------------------------------------

def sinusoidal_pe(max_len, d_model):
    pos = jnp.arange(max_len, dtype=jnp.float32)[:, None]
    div = jnp.exp(jnp.arange(0, d_model, 2, dtype=jnp.float32)
                  * (-math.log(10000.0) / d_model))
    pe = jnp.zeros((max_len, d_model), jnp.float32)
    pe = pe.at[:, 0::2].set(jnp.sin(pos * div))
    pe = pe.at[:, 1::2].set(jnp.cos(pos * div))
    return pe


def seq2seq_forward(params, src, tgt, *, num_heads):
    B, Ts = src.shape
    _, Tt = tgt.shape
    D = params["src_emb"].shape[1]
    pe = params["pe"]

    # embeddings (gather stays in JAX glue) + positional encoding; dropout = identity (eval)
    src_x = (jnp.take(params["src_emb"], src, axis=0) * math.sqrt(D)
             + pe[:Ts][None, :, :]).reshape(B * Ts, D)
    tgt_x = (jnp.take(params["tgt_emb"], tgt, axis=0) * math.sqrt(D)
             + pe[:Tt][None, :, :]).reshape(B * Tt, D)

    # ---- encoder layer (2 fused kernels) ----
    enc = params["enc"]
    src_x = pallas_mha_ln(src_x, src_x, enc["self_attn"], enc["ln1_g"], enc["ln1_b"],
                          B, Ts, Ts, num_heads, causal=False)
    memory = pallas_ffn_ln(src_x, enc["ffn"], enc["ln2_g"], enc["ln2_b"], B, Ts)

    # ---- decoder layer (3 fused kernels) ----
    dec = params["dec"]
    tgt_x = pallas_mha_ln(tgt_x, tgt_x, dec["self_attn"], dec["ln1_g"], dec["ln1_b"],
                          B, Tt, Tt, num_heads, causal=True)
    tgt_x = pallas_mha_ln(tgt_x, memory, dec["cross_attn"], dec["ln2_g"], dec["ln2_b"],
                          B, Tt, Ts, num_heads, causal=False)
    tgt_x = pallas_ffn_ln(tgt_x, dec["ffn"], dec["ln3_g"], dec["ln3_b"], B, Tt)

    # ---- output layer: Linear(d_model, vocab) + log_softmax (1 fused kernel) ----
    out = pallas_output_layer(tgt_x, params["out_w"], params["out_b"], B, Tt)
    V = out.shape[-1]
    return out.reshape(B, Tt, V)


# ----------------------------------------------------------------------------
# Deterministic parameter init
# ----------------------------------------------------------------------------

def _glorot(key, shape):
    fan_in, fan_out = shape[0], shape[1]
    lim = math.sqrt(6.0 / (fan_in + fan_out))
    return jax.random.uniform(key, shape, jnp.float32, -lim, lim)


def init_params(key, d_model, d_ff, vocab_size, max_len):
    keys = iter(jax.random.split(key, 64))

    def attn_params():
        p = {}
        for n in ("q", "k", "v", "o"):
            p["w" + n] = _glorot(next(keys), (d_model, d_model))
            p["b" + n] = jnp.zeros((d_model,), jnp.float32)
        return p

    def ffn_params():
        return {
            "w1": _glorot(next(keys), (d_model, d_ff)),
            "b1": jnp.zeros((d_ff,), jnp.float32),
            "w2": _glorot(next(keys), (d_ff, d_model)),
            "b2": jnp.zeros((d_model,), jnp.float32),
        }

    ones = jnp.ones((d_model,), jnp.float32)
    zeros = jnp.zeros((d_model,), jnp.float32)
    return {
        "pe": sinusoidal_pe(max_len, d_model),
        "src_emb": jax.random.normal(next(keys), (vocab_size, d_model), jnp.float32) * 0.02,
        "tgt_emb": jax.random.normal(next(keys), (vocab_size, d_model), jnp.float32) * 0.02,
        "enc": {
            "self_attn": attn_params(), "ffn": ffn_params(),
            "ln1_g": ones, "ln1_b": zeros, "ln2_g": ones, "ln2_b": zeros,
        },
        "dec": {
            "self_attn": attn_params(), "cross_attn": attn_params(), "ffn": ffn_params(),
            "ln1_g": ones, "ln1_b": zeros, "ln2_g": ones, "ln2_b": zeros,
            "ln3_g": ones, "ln3_b": zeros,
        },
        "out_w": _glorot(next(keys), (d_model, vocab_size)),
        "out_b": jnp.zeros((vocab_size,), jnp.float32),
    }


# ----------------------------------------------------------------------------
# main
# ----------------------------------------------------------------------------

if __name__ == "__main__":
    d_model, n_heads, d_ff, vocab_size, max_len = 32, 4, 64, 64, 16
    B, Ts, Tt = 2, 8, 8

    key = jax.random.PRNGKey(0)
    kp, ks, kt = jax.random.split(key, 3)
    params = init_params(kp, d_model, d_ff, vocab_size, max_len)
    src = jax.random.randint(ks, (B, Ts), 0, vocab_size, dtype=jnp.int32)
    tgt = jax.random.randint(kt, (B, Tt), 0, vocab_size, dtype=jnp.int32)

    # num_heads is static (closed over), so reshape shapes are concrete under jit.
    fwd = jax.jit(functools.partial(seq2seq_forward, num_heads=n_heads))
    out = fwd(params, src, tgt)
    out = jax.block_until_ready(out)

    assert out.shape == (B, Tt, vocab_size), out.shape
    # log_softmax rows must sum to ~1 in prob space
    assert bool(jnp.all(jnp.abs(jnp.sum(jnp.exp(out), axis=-1) - 1.0) < 1e-3))
    print("KERNEL_OK")
</pallas_src>

<mosaic_0001>
module attributes {stable_mosaic.version = 11 : i64} {
  func.func @_ffn_ln_kernel(%arg0: i32, %arg1: memref<8x32xf32, #tpu.memory_space<vmem>>, %arg2: memref<32x64xf32, #tpu.memory_space<vmem>>, %arg3: memref<1x64xf32, #tpu.memory_space<vmem>>, %arg4: memref<64x32xf32, #tpu.memory_space<vmem>>, %arg5: memref<1x32xf32, #tpu.memory_space<vmem>>, %arg6: memref<1x32xf32, #tpu.memory_space<vmem>>, %arg7: memref<1x32xf32, #tpu.memory_space<vmem>>, %arg8: memref<8x32xf32, #tpu.memory_space<vmem>>) attributes {dimension_semantics = [#tpu.dimension_semantics<parallel>], iteration_bounds = array<i64: 2>, scalar_prefetch = 0 : i64, scratch_operands = 0 : i64, tpu.core_type = #tpu.core_type<tc>, window_params = [{transform_indices = @transform_0, window_bounds = array<i64: 8, 32>}, {pipeline_mode = #tpu.pipeline_mode<synchronous>, transform_indices = @transform_1, window_bounds = array<i64: 32, 64>}, {pipeline_mode = #tpu.pipeline_mode<synchronous>, transform_indices = @transform_2, window_bounds = array<i64: 1, 64>}, {pipeline_mode = #tpu.pipeline_mode<synchronous>, transform_indices = @transform_3, window_bounds = array<i64: 64, 32>}, {pipeline_mode = #tpu.pipeline_mode<synchronous>, transform_indices = @transform_4, window_bounds = array<i64: 1, 32>}, {pipeline_mode = #tpu.pipeline_mode<synchronous>, transform_indices = @transform_5, window_bounds = array<i64: 1, 32>}, {pipeline_mode = #tpu.pipeline_mode<synchronous>, transform_indices = @transform_6, window_bounds = array<i64: 1, 32>}, {transform_indices = @transform_7, window_bounds = array<i64: 8, 32>}]} {
    %c0 = arith.constant 0 : index
    %c0_0 = arith.constant 0 : index
    %0 = vector.load %arg1[%c0, %c0_0] : memref<8x32xf32, #tpu.memory_space<vmem>>, vector<8x32xf32>
    %c0_1 = arith.constant 0 : index
    %c0_2 = arith.constant 0 : index
    %1 = vector.load %arg2[%c0_1, %c0_2] : memref<32x64xf32, #tpu.memory_space<vmem>>, vector<32x64xf32>
    %cst = arith.constant dense<0.000000e+00> : vector<8x64xf32>
    %2 = tpu.matmul %0, %1, %cst {dimension_numbers = #tpu.dot_dimension_numbers<[1], [0], [0], [1], [0, 0, 1, 1], [], []>} : vector<8x32xf32>, vector<32x64xf32>, vector<8x64xf32> -> vector<8x64xf32>
    %c0_3 = arith.constant 0 : index
    %c0_4 = arith.constant 0 : index
    %3 = vector.load %arg3[%c0_3, %c0_4] : memref<1x64xf32, #tpu.memory_space<vmem>>, vector<1x64xf32>
    %4 = vector.broadcast %3 : vector<1x64xf32> to vector<8x64xf32>
    %5 = arith.addf %2, %4 : vector<8x64xf32>
    %cst_5 = arith.constant 0.000000e+00 : f32
    %6 = vector.broadcast %cst_5 : f32 to vector<8x64xf32>
    %7 = arith.maximumf %5, %6 : vector<8x64xf32>
    %c0_6 = arith.constant 0 : index
    %c0_7 = arith.constant 0 : index
    %8 = vector.load %arg4[%c0_6, %c0_7] : memref<64x32xf32, #tpu.memory_space<vmem>>, vector<64x32xf32>
    %cst_8 = arith.constant dense<0.000000e+00> : vector<8x32xf32>
    %9 = tpu.matmul %7, %8, %cst_8 {dimension_numbers = #tpu.dot_dimension_numbers<[1], [0], [0], [1], [0, 0, 1, 1], [], []>} : vector<8x64xf32>, vector<64x32xf32>, vector<8x32xf32> -> vector<8x32xf32>
    %c0_9 = arith.constant 0 : index
    %c0_10 = arith.constant 0 : index
    %10 = vector.load %arg5[%c0_9, %c0_10] : memref<1x32xf32, #tpu.memory_space<vmem>>, vector<1x32xf32>
    %11 = vector.broadcast %10 : vector<1x32xf32> to vector<8x32xf32>
    %12 = arith.addf %9, %11 : vector<8x32xf32>
    %13 = arith.addf %0, %12 : vector<8x32xf32>
    %c0_11 = arith.constant 0 : index
    %c0_12 = arith.constant 0 : index
    %14 = vector.load %arg6[%c0_11, %c0_12] : memref<1x32xf32, #tpu.memory_space<vmem>>, vector<1x32xf32>
    %c0_13 = arith.constant 0 : index
    %c0_14 = arith.constant 0 : index
    %15 = vector.load %arg7[%c0_13, %c0_14] : memref<1x32xf32, #tpu.memory_space<vmem>>, vector<1x32xf32>
    %cst_15 = arith.constant dense<0.000000e+00> : vector<8xf32>
    %16 = vector.multi_reduction <add>, %13, %cst_15 [1] : vector<8x32xf32> to vector<8xf32>
    %17 = vector.shape_cast %16 : vector<8xf32> to vector<8x1xf32>
    %cst_16 = arith.constant 3.200000e+01 : f32
    %18 = vector.broadcast %cst_16 : f32 to vector<8x1xf32>
    %19 = arith.divf %17, %18 : vector<8x1xf32>
    %20 = vector.broadcast %19 : vector<8x1xf32> to vector<8x32xf32>
    %21 = arith.subf %13, %20 : vector<8x32xf32>
    %22 = arith.mulf %21, %21 : vector<8x32xf32>
    %cst_17 = arith.constant dense<0.000000e+00> : vector<8xf32>
    %23 = vector.multi_reduction <add>, %22, %cst_17 [1] : vector<8x32xf32> to vector<8xf32>
    %24 = vector.shape_cast %23 : vector<8xf32> to vector<8x1xf32>
    %cst_18 = arith.constant 3.200000e+01 : f32
    %25 = vector.broadcast %cst_18 : f32 to vector<8x1xf32>
    %26 = arith.divf %24, %25 : vector<8x1xf32>
    %27 = vector.broadcast %19 : vector<8x1xf32> to vector<8x32xf32>
    %28 = arith.subf %13, %27 : vector<8x32xf32>
    %cst_19 = arith.constant 9.99999974E-6 : f32
    %29 = vector.broadcast %cst_19 : f32 to vector<8x1xf32>
    %30 = arith.addf %26, %29 : vector<8x1xf32>
    %31 = math.rsqrt %30 : vector<8x1xf32>
    %32 = vector.broadcast %31 : vector<8x1xf32> to vector<8x32xf32>
    %33 = arith.mulf %28, %32 : vector<8x32xf32>
    %34 = vector.broadcast %14 : vector<1x32xf32> to vector<8x32xf32>
    %35 = arith.mulf %33, %34 : vector<8x32xf32>
    %36 = vector.broadcast %15 : vector<1x32xf32> to vector<8x32xf32>
    %37 = arith.addf %35, %36 : vector<8x32xf32>
    %c0_20 = arith.constant 0 : index
    %c0_21 = arith.constant 0 : index
    %38 = vector.load %arg8[%c0_20, %c0_21] : memref<8x32xf32, #tpu.memory_space<vmem>>, vector<8x32xf32>
    tpu.vector_store %arg8[%c0_20, %c0_21], %37 {strides = array<i32>} : memref<8x32xf32, #tpu.memory_space<vmem>>, vector<8x32xf32>,
    return
  }
  func.func @transform_0(%arg0: i32) -> (i32, i32) {
    %c0_i32 = arith.constant 0 : i32
    %c0_i32_0 = arith.constant 0 : i32
    return %arg0, %c0_i32 : i32, i32
  }
  func.func @transform_1(%arg0: i32) -> (i32, i32) {
    %c0_i32 = arith.constant 0 : i32
    %c0_i32_0 = arith.constant 0 : i32
    %c0_i32_1 = arith.constant 0 : i32
    return %c0_i32, %c0_i32_0 : i32, i32
  }
  func.func @transform_2(%arg0: i32) -> (i32, i32) {
    %c0_i32 = arith.constant 0 : i32
    %c0_i32_0 = arith.constant 0 : i32
    %c0_i32_1 = arith.constant 0 : i32
    return %c0_i32, %c0_i32_0 : i32, i32
  }
  func.func @transform_3(%arg0: i32) -> (i32, i32) {
    %c0_i32 = arith.constant 0 : i32
    %c0_i32_0 = arith.constant 0 : i32
    %c0_i32_1 = arith.constant 0 : i32
    return %c0_i32, %c0_i32_0 : i32, i32
  }
  func.func @transform_4(%arg0: i32) -> (i32, i32) {
    %c0_i32 = arith.constant 0 : i32
    %c0_i32_0 = arith.constant 0 : i32
    %c0_i32_1 = arith.constant 0 : i32
    return %c0_i32, %c0_i32_0 : i32, i32
  }
  func.func @transform_5(%arg0: i32) -> (i32, i32) {
    %c0_i32 = arith.constant 0 : i32
    %c0_i32_0 = arith.constant 0 : i32
    %c0_i32_1 = arith.constant 0 : i32
    return %c0_i32, %c0_i32_0 : i32, i32
  }
  func.func @transform_6(%arg0: i32) -> (i32, i32) {
    %c0_i32 = arith.constant 0 : i32
    %c0_i32_0 = arith.constant 0 : i32
    %c0_i32_1 = arith.constant 0 : i32
    return %c0_i32, %c0_i32_0 : i32, i32
  }
  func.func @transform_7(%arg0: i32) -> (i32, i32) {
    %c0_i32 = arith.constant 0 : i32
    %c0_i32_0 = arith.constant 0 : i32
    return %arg0, %c0_i32 : i32, i32
  }
}

module attributes {stable_mosaic.version = 11 : i64} {
  func.func @_mha_ln_kernel(%arg0: i32, %arg1: memref<8x32xf32, #tpu.memory_space<vmem>>, %arg2: memref<8x32xf32, #tpu.memory_space<vmem>>, %arg3: memref<32x32xf32, #tpu.memory_space<vmem>>, %arg4: memref<1x32xf32, #tpu.memory_space<vmem>>, %arg5: memref<32x32xf32, #tpu.memory_space<vmem>>, %arg6: memref<1x32xf32, #tpu.memory_space<vmem>>, %arg7: memref<32x32xf32, #tpu.memory_space<vmem>>, %arg8: memref<1x32xf32, #tpu.memory_space<vmem>>, %arg9: memref<32x32xf32, #tpu.memory_space<vmem>>, %arg10: memref<1x32xf32, #tpu.memory_space<vmem>>, %arg11: memref<1x32xf32, #tpu.memory_space<vmem>>, %arg12: memref<1x32xf32, #tpu.memory_space<vmem>>, %arg13: memref<8x32xf32, #tpu.memory_space<vmem>>) attributes {dimension_semantics = [#tpu.dimension_semantics<parallel>], iteration_bounds = array<i64: 2>, scalar_prefetch = 0 : i64, scratch_operands = 0 : i64, tpu.core_type = #tpu.core_type<tc>, window_params = [{transform_indices = @transform_0, window_bounds = array<i64: 8, 32>}, {transform_indices = @transform_1, window_bounds = array<i64: 8, 32>}, {pipeline_mode = #tpu.pipeline_mode<synchronous>, transform_indices = @transform_2, window_bounds = array<i64: 32, 32>}, {pipeline_mode = #tpu.pipeline_mode<synchronous>, transform_indices = @transform_3, window_bounds = array<i64: 1, 32>}, {pipeline_mode = #tpu.pipeline_mode<synchronous>, transform_indices = @transform_4, window_bounds = array<i64: 32, 32>}, {pipeline_mode = #tpu.pipeline_mode<synchronous>, transform_indices = @transform_5, window_bounds = array<i64: 1, 32>}, {pipeline_mode = #tpu.pipeline_mode<synchronous>, transform_indices = @transform_6, window_bounds = array<i64: 32, 32>}, {pipeline_mode = #tpu.pipeline_mode<synchronous>, transform_indices = @transform_7, window_bounds = array<i64: 1, 32>}, {pipeline_mode = #tpu.pipeline_mode<synchronous>, transform_indices = @transform_8, window_bounds = array<i64: 32, 32>}, {pipeline_mode = #tpu.pipeline_mode<synchronous>, transform_indices = @transform_9, window_bounds = array<i64: 1, 32>}, {pipeline_mode = #tpu.pipeline_mode<synchronous>, transform_indices = @transform_10, window_bounds = array<i64: 1, 32>}, {pipeline_mode = #tpu.pipeline_mode<synchronous>, transform_indices = @transform_11, window_bounds = array<i64: 1, 32>}, {transform_indices = @transform_12, window_bounds = array<i64: 8, 32>}]} {
    %c0 = arith.constant 0 : index
    %c0_0 = arith.constant 0 : index
    %0 = vector.load %arg1[%c0, %c0_0] : memref<8x32xf32, #tpu.memory_space<vmem>>, vector<8x32xf32>
    %c0_1 = arith.constant 0 : index
    %c0_2 = arith.constant 0 : index
    %1 = vector.load %arg2[%c0_1, %c0_2] : memref<8x32xf32, #tpu.memory_space<vmem>>, vector<8x32xf32>
    %c0_3 = arith.constant 0 : index
    %c0_4 = arith.constant 0 : index
    %2 = vector.load %arg3[%c0_3, %c0_4] : memref<32x32xf32, #tpu.memory_space<vmem>>, vector<32x32xf32>
    %cst = arith.constant dense<0.000000e+00> : vector<8x32xf32>
    %3 = tpu.matmul %0, %2, %cst {dimension_numbers = #tpu.dot_dimension_numbers<[1], [0], [0], [1], [0, 0, 1, 1], [], []>} : vector<8x32xf32>, vector<32x32xf32>, vector<8x32xf32> -> vector<8x32xf32>
    %c0_5 = arith.constant 0 : index
    %c0_6 = arith.constant 0 : index
    %4 = vector.load %arg4[%c0_5, %c0_6] : memref<1x32xf32, #tpu.memory_space<vmem>>, vector<1x32xf32>
    %5 = vector.broadcast %4 : vector<1x32xf32> to vector<8x32xf32>
    %6 = arith.addf %3, %5 : vector<8x32xf32>
    %c0_7 = arith.constant 0 : index
    %c0_8 = arith.constant 0 : index
    %7 = vector.load %arg5[%c0_7, %c0_8] : memref<32x32xf32, #tpu.memory_space<vmem>>, vector<32x32xf32>
    %cst_9 = arith.constant dense<0.000000e+00> : vector<8x32xf32>
    %8 = tpu.matmul %1, %7, %cst_9 {dimension_numbers = #tpu.dot_dimension_numbers<[1], [0], [0], [1], [0, 0, 1, 1], [], []>} : vector<8x32xf32>, vector<32x32xf32>, vector<8x32xf32> -> vector<8x32xf32>
    %c0_10 = arith.constant 0 : index
    %c0_11 = arith.constant 0 : index
    %9 = vector.load %arg6[%c0_10, %c0_11] : memref<1x32xf32, #tpu.memory_space<vmem>>, vector<1x32xf32>
    %10 = vector.broadcast %9 : vector<1x32xf32> to vector<8x32xf32>
    %11 = arith.addf %8, %10 : vector<8x32xf32>
    %c0_12 = arith.constant 0 : index
    %c0_13 = arith.constant 0 : index
    %12 = vector.load %arg7[%c0_12, %c0_13] : memref<32x32xf32, #tpu.memory_space<vmem>>, vector<32x32xf32>
    %cst_14 = arith.constant dense<0.000000e+00> : vector<8x32xf32>
    %13 = tpu.matmul %1, %12, %cst_14 {dimension_numbers = #tpu.dot_dimension_numbers<[1], [0], [0], [1], [0, 0, 1, 1], [], []>} : vector<8x32xf32>, vector<32x32xf32>, vector<8x32xf32> -> vector<8x32xf32>
    %c0_15 = arith.constant 0 : index
    %c0_16 = arith.constant 0 : index
    %14 = vector.load %arg8[%c0_15, %c0_16] : memref<1x32xf32, #tpu.memory_space<vmem>>, vector<1x32xf32>
    %15 = vector.broadcast %14 : vector<1x32xf32> to vector<8x32xf32>
    %16 = arith.addf %13, %15 : vector<8x32xf32>
    %17 = vector.extract_strided_slice %6 {offsets = [0, 0], sizes = [8, 8], strides = [1, 1]} : vector<8x32xf32> to vector<8x8xf32>
    %18 = vector.extract_strided_slice %11 {offsets = [0, 0], sizes = [8, 8], strides = [1, 1]} : vector<8x32xf32> to vector<8x8xf32>
    %19 = vector.extract_strided_slice %16 {offsets = [0, 0], sizes = [8, 8], strides = [1, 1]} : vector<8x32xf32> to vector<8x8xf32>
    %20 = tpu.transpose %18, [1, 0] : vector<8x8xf32> -> vector<8x8xf32>
    %cst_17 = arith.constant dense<0.000000e+00> : vector<8x8xf32>
    %21 = tpu.matmul %17, %20, %cst_17 {dimension_numbers = #tpu.dot_dimension_numbers<[1], [0], [0], [1], [0, 0, 1, 1], [], []>} : vector<8x8xf32>, vector<8x8xf32>, vector<8x8xf32> -> vector<8x8xf32>
    %cst_18 = arith.constant 0.353553385 : f32
    %22 = vector.broadcast %cst_18 : f32 to vector<8x8xf32>
    %23 = arith.mulf %21, %22 : vector<8x8xf32>
    %cst_19 = arith.constant dense<0xFF800000> : vector<8xf32>
    %24 = vector.multi_reduction <maximumf>, %23, %cst_19 [1] : vector<8x8xf32> to vector<8xf32>
    %25 = vector.shape_cast %24 : vector<8xf32> to vector<8x1xf32>
    %26 = vector.broadcast %25 : vector<8x1xf32> to vector<8x8xf32>
    %27 = arith.subf %23, %26 : vector<8x8xf32>
    %28 = math.exp %27 : vector<8x8xf32>
    %cst_20 = arith.constant dense<0.000000e+00> : vector<8xf32>
    %29 = vector.multi_reduction <add>, %28, %cst_20 [1] : vector<8x8xf32> to vector<8xf32>
    %30 = vector.shape_cast %29 : vector<8xf32> to vector<8x1xf32>
    %31 = tpu.reciprocal %30 {approx = true} : vector<8x1xf32> -> vector<8x1xf32>
    %32 = vector.broadcast %31 : vector<8x1xf32> to vector<8x8xf32>
    %33 = arith.mulf %28, %32 : vector<8x8xf32>
    %cst_21 = arith.constant dense<0.000000e+00> : vector<8x8xf32>
    %34 = tpu.matmul %33, %19, %cst_21 {dimension_numbers = #tpu.dot_dimension_numbers<[1], [0], [0], [1], [0, 0, 1, 1], [], []>} : vector<8x8xf32>, vector<8x8xf32>, vector<8x8xf32> -> vector<8x8xf32>
    %35 = vector.extract_strided_slice %6 {offsets = [0, 8], sizes = [8, 8], strides = [1, 1]} : vector<8x32xf32> to vector<8x8xf32>
    %36 = vector.extract_strided_slice %11 {offsets = [0, 8], sizes = [8, 8], strides = [1, 1]} : vector<8x32xf32> to vector<8x8xf32>
    %37 = vector.extract_strided_slice %16 {offsets = [0, 8], sizes = [8, 8], strides = [1, 1]} : vector<8x32xf32> to vector<8x8xf32>
    %38 = tpu.transpose %36, [1, 0] : vector<8x8xf32> -> vector<8x8xf32>
    %cst_22 = arith.constant dense<0.000000e+00> : vector<8x8xf32>
    %39 = tpu.matmul %35, %38, %cst_22 {dimension_numbers = #tpu.dot_dimension_numbers<[1], [0], [0], [1], [0, 0, 1, 1], [], []>} : vector<8x8xf32>, vector<8x8xf32>, vector<8x8xf32> -> vector<8x8xf32>
    %cst_23 = arith.constant 0.353553385 : f32
    %40 = vector.broadcast %cst_23 : f32 to vector<8x8xf32>
    %41 = arith.mulf %39, %40 : vector<8x8xf32>
    %cst_24 = arith.constant dense<0xFF800000> : vector<8xf32>
    %42 = vector.multi_reduction <maximumf>, %41, %cst_24 [1] : vector<8x8xf32> to vector<8xf32>
    %43 = vector.shape_cast %42 : vector<8xf32> to vector<8x1xf32>
    %44 = vector.broadcast %43 : vector<8x1xf32> to vector<8x8xf32>
    %45 = arith.subf %41, %44 : vector<8x8xf32>
    %46 = math.exp %45 : vector<8x8xf32>
    %cst_25 = arith.constant dense<0.000000e+00> : vector<8xf32>
    %47 = vector.multi_reduction <add>, %46, %cst_25 [1] : vector<8x8xf32> to vector<8xf32>
    %48 = vector.shape_cast %47 : vector<8xf32> to vector<8x1xf32>
    %49 = tpu.reciprocal %48 {approx = true} : vector<8x1xf32> -> vector<8x1xf32>
    %50 = vector.broadcast %49 : vector<8x1xf32> to vector<8x8xf32>
    %51 = arith.mulf %46, %50 : vector<8x8xf32>
    %cst_26 = arith.constant dense<0.000000e+00> : vector<8x8xf32>
    %52 = tpu.matmul %51, %37, %cst_26 {dimension_numbers = #tpu.dot_dimension_numbers<[1], [0], [0], [1], [0, 0, 1, 1], [], []>} : vector<8x8xf32>, vector<8x8xf32>, vector<8x8xf32> -> vector<8x8xf32>
    %53 = vector.extract_strided_slice %6 {offsets = [0, 16], sizes = [8, 8], strides = [1, 1]} : vector<8x32xf32> to vector<8x8xf32>
    %54 = vector.extract_strided_slice %11 {offsets = [0, 16], sizes = [8, 8], strides = [1, 1]} : vector<8x32xf32> to vector<8x8xf32>
    %55 = vector.extract_strided_slice %16 {offsets = [0, 16], sizes = [8, 8], strides = [1, 1]} : vector<8x32xf32> to vector<8x8xf32>
    %56 = tpu.transpose %54, [1, 0] : vector<8x8xf32> -> vector<8x8xf32>
    %cst_27 = arith.constant dense<0.000000e+00> : vector<8x8xf32>
    %57 = tpu.matmul %53, %56, %cst_27 {dimension_numbers = #tpu.dot_dimension_numbers<[1], [0], [0], [1], [0, 0, 1, 1], [], []>} : vector<8x8xf32>, vector<8x8xf32>, vector<8x8xf32> -> vector<8x8xf32>
    %cst_28 = arith.constant 0.353553385 : f32
    %58 = vector.broadcast %cst_28 : f32 to vector<8x8xf32>
    %59 = arith.mulf %57, %58 : vector<8x8xf32>
    %cst_29 = arith.constant dense<0xFF800000> : vector<8xf32>
    %60 = vector.multi_reduction <maximumf>, %59, %cst_29 [1] : vector<8x8xf32> to vector<8xf32>
    %61 = vector.shape_cast %60 : vector<8xf32> to vector<8x1xf32>
    %62 = vector.broadcast %61 : vector<8x1xf32> to vector<8x8xf32>
    %63 = arith.subf %59, %62 : vector<8x8xf32>
    %64 = math.exp %63 : vector<8x8xf32>
    %cst_30 = arith.constant dense<0.000000e+00> : vector<8xf32>
    %65 = vector.multi_reduction <add>, %64, %cst_30 [1] : vector<8x8xf32> to vector<8xf32>
    %66 = vector.shape_cast %65 : vector<8xf32> to vector<8x1xf32>
    %67 = tpu.reciprocal %66 {approx = true} : vector<8x1xf32> -> vector<8x1xf32>
    %68 = vector.broadcast %67 : vector<8x1xf32> to vector<8x8xf32>
    %69 = arith.mulf %64, %68 : vector<8x8xf32>
    %cst_31 = arith.constant dense<0.000000e+00> : vector<8x8xf32>
    %70 = tpu.matmul %69, %55, %cst_31 {dimension_numbers = #tpu.dot_dimension_numbers<[1], [0], [0], [1], [0, 0, 1, 1], [], []>} : vector<8x8xf32>, vector<8x8xf32>, vector<8x8xf32> -> vector<8x8xf32>
    %71 = vector.extract_strided_slice %6 {offsets = [0, 24], sizes = [8, 8], strides = [1, 1]} : vector<8x32xf32> to vector<8x8xf32>
    %72 = vector.extract_strided_slice %11 {offsets = [0, 24], sizes = [8, 8], strides = [1, 1]} : vector<8x32xf32> to vector<8x8xf32>
    %73 = vector.extract_strided_slice %16 {offsets = [0, 24], sizes = [8, 8], strides = [1, 1]} : vector<8x32xf32> to vector<8x8xf32>
    %74 = tpu.transpose %72, [1, 0] : vector<8x8xf32> -> vector<8x8xf32>
    %cst_32 = arith.constant dense<0.000000e+00> : vector<8x8xf32>
    %75 = tpu.matmul %71, %74, %cst_32 {dimension_numbers = #tpu.dot_dimension_numbers<[1], [0], [0], [1], [0, 0, 1, 1], [], []>} : vector<8x8xf32>, vector<8x8xf32>, vector<8x8xf32> -> vector<8x8xf32>
    %cst_33 = arith.constant 0.353553385 : f32
    %76 = vector.broadcast %cst_33 : f32 to vector<8x8xf32>
    %77 = arith.mulf %75, %76 : vector<8x8xf32>
    %cst_34 = arith.constant dense<0xFF800000> : vector<8xf32>
    %78 = vector.multi_reduction <maximumf>, %77, %cst_34 [1] : vector<8x8xf32> to vector<8xf32>
    %79 = vector.shape_cast %78 : vector<8xf32> to vector<8x1xf32>
    %80 = vector.broadcast %79 : vector<8x1xf32> to vector<8x8xf32>
    %81 = arith.subf %77, %80 : vector<8x8xf32>
    %82 = math.exp %81 : vector<8x8xf32>
    %cst_35 = arith.constant dense<0.000000e+00> : vector<8xf32>
    %83 = vector.multi_reduction <add>, %82, %cst_35 [1] : vector<8x8xf32> to vector<8xf32>
    %84 = vector.shape_cast %83 : vector<8xf32> to vector<8x1xf32>
    %85 = tpu.reciprocal %84 {approx = true} : vector<8x1xf32> -> vector<8x1xf32>
    %86 = vector.broadcast %85 : vector<8x1xf32> to vector<8x8xf32>
    %87 = arith.mulf %82, %86 : vector<8x8xf32>
    %cst_36 = arith.constant dense<0.000000e+00> : vector<8x8xf32>
    %88 = tpu.matmul %87, %73, %cst_36 {dimension_numbers = #tpu.dot_dimension_numbers<[1], [0], [0], [1], [0, 0, 1, 1], [], []>} : vector<8x8xf32>, vector<8x8xf32>, vector<8x8xf32> -> vector<8x8xf32>
    %89 = tpu.concatenate %34, %52, %70, %88 in 1 : vector<8x8xf32>, vector<8x8xf32>, vector<8x8xf32>, vector<8x8xf32> -> vector<8x32xf32>
    %c0_37 = arith.constant 0 : index
    %c0_38 = arith.constant 0 : index
    %90 = vector.load %arg9[%c0_37, %c0_38] : memref<32x32xf32, #tpu.memory_space<vmem>>, vector<32x32xf32>
    %cst_39 = arith.constant dense<0.000000e+00> : vector<8x32xf32>
    %91 = tpu.matmul %89, %90, %cst_39 {dimension_numbers = #tpu.dot_dimension_numbers<[1], [0], [0], [1], [0, 0, 1, 1], [], []>} : vector<8x32xf32>, vector<32x32xf32>, vector<8x32xf32> -> vector<8x32xf32>
    %c0_40 = arith.constant 0 : index
    %c0_41 = arith.constant 0 : index
    %92 = vector.load %arg10[%c0_40, %c0_41] : memref<1x32xf32, #tpu.memory_space<vmem>>, vector<1x32xf32>
    %93 = vector.broadcast %92 : vector<1x32xf32> to vector<8x32xf32>
    %94 = arith.addf %91, %93 : vector<8x32xf32>
    %95 = arith.addf %0, %94 : vector<8x32xf32>
    %c0_42 = arith.constant 0 : index
    %c0_43 = arith.constant 0 : index
    %96 = vector.load %arg11[%c0_42, %c0_43] : memref<1x32xf32, #tpu.memory_space<vmem>>, vector<1x32xf32>
    %c0_44 = arith.constant 0 : index
    %c0_45 = arith.constant 0 : index
    %97 = vector.load %arg12[%c0_44, %c0_45] : memref<1x32xf32, #tpu.memory_space<vmem>>, vector<1x32xf32>
    %cst_46 = arith.constant dense<0.000000e+00> : vector<8xf32>
    %98 = vector.multi_reduction <add>, %95, %cst_46 [1] : vector<8x32xf32> to vector<8xf32>
    %99 = vector.shape_cast %98 : vector<8xf32> to vector<8x1xf32>
    %cst_47 = arith.constant 3.200000e+01 : f32
    %100 = vector.broadcast %cst_47 : f32 to vector<8x1xf32>
    %101 = arith.divf %99, %100 : vector<8x1xf32>
    %102 = vector.broadcast %101 : vector<8x1xf32> to vector<8x32xf32>
    %103 = arith.subf %95, %102 : vector<8x32xf32>
    %104 = arith.mulf %103, %103 : vector<8x32xf32>
    %cst_48 = arith.constant dense<0.000000e+00> : vector<8xf32>
    %105 = vector.multi_reduction <add>, %104, %cst_48 [1] : vector<8x32xf32> to vector<8xf32>
    %106 = vector.shape_cast %105 : vector<8xf32> to vector<8x1xf32>
    %cst_49 = arith.constant 3.200000e+01 : f32
    %107 = vector.broadcast %cst_49 : f32 to vector<8x1xf32>
    %108 = arith.divf %106, %107 : vector<8x1xf32>
    %109 = vector.broadcast %101 : vector<8x1xf32> to vector<8x32xf32>
    %110 = arith.subf %95, %109 : vector<8x32xf32>
    %cst_50 = arith.constant 9.99999974E-6 : f32
    %111 = vector.broadcast %cst_50 : f32 to vector<8x1xf32>
    %112 = arith.addf %108, %111 : vector<8x1xf32>
    %113 = math.rsqrt %112 : vector<8x1xf32>
    %114 = vector.broadcast %113 : vector<8x1xf32> to vector<8x32xf32>
    %115 = arith.mulf %110, %114 : vector<8x32xf32>
    %116 = vector.broadcast %96 : vector<1x32xf32> to vector<8x32xf32>
    %117 = arith.mulf %115, %116 : vector<8x32xf32>
    %118 = vector.broadcast %97 : vector<1x32xf32> to vector<8x32xf32>
    %119 = arith.addf %117, %118 : vector<8x32xf32>
    %c0_51 = arith.constant 0 : index
    %c0_52 = arith.constant 0 : index
    %120 = vector.load %arg13[%c0_51, %c0_52] : memref<8x32xf32, #tpu.memory_space<vmem>>, vector<8x32xf32>
    tpu.vector_store %arg13[%c0_51, %c0_52], %119 {strides = array<i32>} : memref<8x32xf32, #tpu.memory_space<vmem>>, vector<8x32xf32>,
    return
  }
  func.func @transform_0(%arg0: i32) -> (i32, i32) {
    %c0_i32 = arith.constant 0 : i32
    %c0_i32_0 = arith.constant 0 : i32
    return %arg0, %c0_i32 : i32, i32
  }
  func.func @transform_1(%arg0: i32) -> (i32, i32) {
    %c0_i32 = arith.constant 0 : i32
    %c0_i32_0 = arith.constant 0 : i32
    return %arg0, %c0_i32 : i32, i32
  }
  func.func @transform_2(%arg0: i32) -> (i32, i32) {
    %c0_i32 = arith.constant 0 : i32
    %c0_i32_0 = arith.constant 0 : i32
    %c0_i32_1 = arith.constant 0 : i32
    return %c0_i32, %c0_i32_0 : i32, i32
  }
  func.func @transform_3(%arg0: i32) -> (i32, i32) {
    %c0_i32 = arith.constant 0 : i32
    %c0_i32_0 = arith.constant 0 : i32
    %c0_i32_1 = arith.constant 0 : i32
    return %c0_i32, %c0_i32_0 : i32, i32
  }
  func.func @transform_4(%arg0: i32) -> (i32, i32) {
    %c0_i32 = arith.constant 0 : i32
    %c0_i32_0 = arith.constant 0 : i32
    %c0_i32_1 = arith.constant 0 : i32
    return %c0_i32, %c0_i32_0 : i32, i32
  }
  func.func @transform_5(%arg0: i32) -> (i32, i32) {
    %c0_i32 = arith.constant 0 : i32
    %c0_i32_0 = arith.constant 0 : i32
    %c0_i32_1 = arith.constant 0 : i32
    return %c0_i32, %c0_i32_0 : i32, i32
  }
  func.func @transform_6(%arg0: i32) -> (i32, i32) {
    %c0_i32 = arith.constant 0 : i32
    %c0_i32_0 = arith.constant 0 : i32
    %c0_i32_1 = arith.constant 0 : i32
    return %c0_i32, %c0_i32_0 : i32, i32
  }
  func.func @transform_7(%arg0: i32) -> (i32, i32) {
    %c0_i32 = arith.constant 0 : i32
    %c0_i32_0 = arith.constant 0 : i32
    %c0_i32_1 = arith.constant 0 : i32
    return %c0_i32, %c0_i32_0 : i32, i32
  }
  func.func @transform_8(%arg0: i32) -> (i32, i32) {
    %c0_i32 = arith.constant 0 : i32
    %c0_i32_0 = arith.constant 0 : i32
    %c0_i32_1 = arith.constant 0 : i32
    return %c0_i32, %c0_i32_0 : i32, i32
  }
  func.func @transform_9(%arg0: i32) -> (i32, i32) {
    %c0_i32 = arith.constant 0 : i32
    %c0_i32_0 = arith.constant 0 : i32
    %c0_i32_1 = arith.constant 0 : i32
    return %c0_i32, %c0_i32_0 : i32, i32
  }
  func.func @transform_10(%arg0: i32) -> (i32, i32) {
    %c0_i32 = arith.constant 0 : i32
    %c0_i32_0 = arith.constant 0 : i32
    %c0_i32_1 = arith.constant 0 : i32
    return %c0_i32, %c0_i32_0 : i32, i32
  }
  func.func @transform_11(%arg0: i32) -> (i32, i32) {
    %c0_i32 = arith.constant 0 : i32
    %c0_i32_0 = arith.constant 0 : i32
    %c0_i32_1 = arith.constant 0 : i32
    return %c0_i32, %c0_i32_0 : i32, i32
  }
  func.func @transform_12(%arg0: i32) -> (i32, i32) {
    %c0_i32 = arith.constant 0 : i32
    %c0_i32_0 = arith.constant 0 : i32
    return %arg0, %c0_i32 : i32, i32
  }
}

module attributes {stable_mosaic.version = 11 : i64} {
  func.func @_out_logsoftmax_kernel(%arg0: i32, %arg1: memref<8x32xf32, #tpu.memory_space<vmem>>, %arg2: memref<32x64xf32, #tpu.memory_space<vmem>>, %arg3: memref<1x64xf32, #tpu.memory_space<vmem>>, %arg4: memref<8x64xf32, #tpu.memory_space<vmem>>) attributes {dimension_semantics = [#tpu.dimension_semantics<parallel>], iteration_bounds = array<i64: 2>, scalar_prefetch = 0 : i64, scratch_operands = 0 : i64, tpu.core_type = #tpu.core_type<tc>, window_params = [{transform_indices = @transform_0, window_bounds = array<i64: 8, 32>}, {pipeline_mode = #tpu.pipeline_mode<synchronous>, transform_indices = @transform_1, window_bounds = array<i64: 32, 64>}, {pipeline_mode = #tpu.pipeline_mode<synchronous>, transform_indices = @transform_2, window_bounds = array<i64: 1, 64>}, {transform_indices = @transform_3, window_bounds = array<i64: 8, 64>}]} {
    %c0 = arith.constant 0 : index
    %c0_0 = arith.constant 0 : index
    %0 = vector.load %arg1[%c0, %c0_0] : memref<8x32xf32, #tpu.memory_space<vmem>>, vector<8x32xf32>
    %c0_1 = arith.constant 0 : index
    %c0_2 = arith.constant 0 : index
    %1 = vector.load %arg2[%c0_1, %c0_2] : memref<32x64xf32, #tpu.memory_space<vmem>>, vector<32x64xf32>
    %cst = arith.constant dense<0.000000e+00> : vector<8x64xf32>
    %2 = tpu.matmul %0, %1, %cst {dimension_numbers = #tpu.dot_dimension_numbers<[1], [0], [0], [1], [0, 0, 1, 1], [], []>} : vector<8x32xf32>, vector<32x64xf32>, vector<8x64xf32> -> vector<8x64xf32>
    %c0_3 = arith.constant 0 : index
    %c0_4 = arith.constant 0 : index
    %3 = vector.load %arg3[%c0_3, %c0_4] : memref<1x64xf32, #tpu.memory_space<vmem>>, vector<1x64xf32>
    %4 = vector.broadcast %3 : vector<1x64xf32> to vector<8x64xf32>
    %5 = arith.addf %2, %4 : vector<8x64xf32>
    %cst_5 = arith.constant dense<0xFF800000> : vector<8xf32>
    %6 = vector.multi_reduction <maximumf>, %5, %cst_5 [1] : vector<8x64xf32> to vector<8xf32>
    %7 = vector.shape_cast %6 : vector<8xf32> to vector<8x1xf32>
    %8 = vector.broadcast %7 : vector<8x1xf32> to vector<8x64xf32>
    %9 = arith.subf %5, %8 : vector<8x64xf32>
    %10 = math.exp %9 : vector<8x64xf32>
    %cst_6 = arith.constant dense<0.000000e+00> : vector<8xf32>
    %11 = vector.multi_reduction <add>, %10, %cst_6 [1] : vector<8x64xf32> to vector<8xf32>
    %12 = vector.shape_cast %11 : vector<8xf32> to vector<8x1xf32>
    %13 = math.log %12 : vector<8x1xf32>
    %14 = vector.broadcast %13 : vector<8x1xf32> to vector<8x64xf32>
    %15 = arith.subf %9, %14 : vector<8x64xf32>
    %c0_7 = arith.constant 0 : index
    %c0_8 = arith.constant 0 : index
    %16 = vector.load %arg4[%c0_7, %c0_8] : memref<8x64xf32, #tpu.memory_space<vmem>>, vector<8x64xf32>
    tpu.vector_store %arg4[%c0_7, %c0_8], %15 {strides = array<i32>} : memref<8x64xf32, #tpu.memory_space<vmem>>, vector<8x64xf32>,
    return
  }
  func.func @transform_0(%arg0: i32) -> (i32, i32) {
    %c0_i32 = arith.constant 0 : i32
    %c0_i32_0 = arith.constant 0 : i32
    return %arg0, %c0_i32 : i32, i32
  }
  func.func @transform_1(%arg0: i32) -> (i32, i32) {
    %c0_i32 = arith.constant 0 : i32
    %c0_i32_0 = arith.constant 0 : i32
    %c0_i32_1 = arith.constant 0 : i32
    return %c0_i32, %c0_i32_0 : i32, i32
  }
  func.func @transform_2(%arg0: i32) -> (i32, i32) {
    %c0_i32 = arith.constant 0 : i32
    %c0_i32_0 = arith.constant 0 : i32
    %c0_i32_1 = arith.constant 0 : i32
    return %c0_i32, %c0_i32_0 : i32, i32
  }
  func.func @transform_3(%arg0: i32) -> (i32, i32) {
    %c0_i32 = arith.constant 0 : i32
    %c0_i32_0 = arith.constant 0 : i32
    return %arg0, %c0_i32 : i32, i32
  }
}

module attributes {stable_mosaic.version = 11 : i64} {
  func.func @_mha_ln_kernel(%arg0: i32, %arg1: memref<8x32xf32, #tpu.memory_space<vmem>>, %arg2: memref<8x32xf32, #tpu.memory_space<vmem>>, %arg3: memref<32x32xf32, #tpu.memory_space<vmem>>, %arg4: memref<1x32xf32, #tpu.memory_space<vmem>>, %arg5: memref<32x32xf32, #tpu.memory_space<vmem>>, %arg6: memref<1x32xf32, #tpu.memory_space<vmem>>, %arg7: memref<32x32xf32, #tpu.memory_space<vmem>>, %arg8: memref<1x32xf32, #tpu.memory_space<vmem>>, %arg9: memref<32x32xf32, #tpu.memory_space<vmem>>, %arg10: memref<1x32xf32, #tpu.memory_space<vmem>>, %arg11: memref<1x32xf32, #tpu.memory_space<vmem>>, %arg12: memref<1x32xf32, #tpu.memory_space<vmem>>, %arg13: memref<8x32xf32, #tpu.memory_space<vmem>>) attributes {dimension_semantics = [#tpu.dimension_semantics<parallel>], iteration_bounds = array<i64: 2>, scalar_prefetch = 0 : i64, scratch_operands = 0 : i64, tpu.core_type = #tpu.core_type<tc>, window_params = [{transform_indices = @transform_0, window_bounds = array<i64: 8, 32>}, {transform_indices = @transform_1, window_bounds = array<i64: 8, 32>}, {pipeline_mode = #tpu.pipeline_mode<synchronous>, transform_indices = @transform_2, window_bounds = array<i64: 32, 32>}, {pipeline_mode = #tpu.pipeline_mode<synchronous>, transform_indices = @transform_3, window_bounds = array<i64: 1, 32>}, {pipeline_mode = #tpu.pipeline_mode<synchronous>, transform_indices = @transform_4, window_bounds = array<i64: 32, 32>}, {pipeline_mode = #tpu.pipeline_mode<synchronous>, transform_indices = @transform_5, window_bounds = array<i64: 1, 32>}, {pipeline_mode = #tpu.pipeline_mode<synchronous>, transform_indices = @transform_6, window_bounds = array<i64: 32, 32>}, {pipeline_mode = #tpu.pipeline_mode<synchronous>, transform_indices = @transform_7, window_bounds = array<i64: 1, 32>}, {pipeline_mode = #tpu.pipeline_mode<synchronous>, transform_indices = @transform_8, window_bounds = array<i64: 32, 32>}, {pipeline_mode = #tpu.pipeline_mode<synchronous>, transform_indices = @transform_9, window_bounds = array<i64: 1, 32>}, {pipeline_mode = #tpu.pipeline_mode<synchronous>, transform_indices = @transform_10, window_bounds = array<i64: 1, 32>}, {pipeline_mode = #tpu.pipeline_mode<synchronous>, transform_indices = @transform_11, window_bounds = array<i64: 1, 32>}, {transform_indices = @transform_12, window_bounds = array<i64: 8, 32>}]} {
    %c0 = arith.constant 0 : index
    %c0_0 = arith.constant 0 : index
    %0 = vector.load %arg1[%c0, %c0_0] : memref<8x32xf32, #tpu.memory_space<vmem>>, vector<8x32xf32>
    %c0_1 = arith.constant 0 : index
    %c0_2 = arith.constant 0 : index
    %1 = vector.load %arg2[%c0_1, %c0_2] : memref<8x32xf32, #tpu.memory_space<vmem>>, vector<8x32xf32>
    %c0_3 = arith.constant 0 : index
    %c0_4 = arith.constant 0 : index
    %2 = vector.load %arg3[%c0_3, %c0_4] : memref<32x32xf32, #tpu.memory_space<vmem>>, vector<32x32xf32>
    %cst = arith.constant dense<0.000000e+00> : vector<8x32xf32>
    %3 = tpu.matmul %0, %2, %cst {dimension_numbers = #tpu.dot_dimension_numbers<[1], [0], [0], [1], [0, 0, 1, 1], [], []>} : vector<8x32xf32>, vector<32x32xf32>, vector<8x32xf32> -> vector<8x32xf32>
    %c0_5 = arith.constant 0 : index
    %c0_6 = arith.constant 0 : index
    %4 = vector.load %arg4[%c0_5, %c0_6] : memref<1x32xf32, #tpu.memory_space<vmem>>, vector<1x32xf32>
    %5 = vector.broadcast %4 : vector<1x32xf32> to vector<8x32xf32>
    %6 = arith.addf %3, %5 : vector<8x32xf32>
    %c0_7 = arith.constant 0 : index
    %c0_8 = arith.constant 0 : index
    %7 = vector.load %arg5[%c0_7, %c0_8] : memref<32x32xf32, #tpu.memory_space<vmem>>, vector<32x32xf32>
    %cst_9 = arith.constant dense<0.000000e+00> : vector<8x32xf32>
    %8 = tpu.matmul %1, %7, %cst_9 {dimension_numbers = #tpu.dot_dimension_numbers<[1], [0], [0], [1], [0, 0, 1, 1], [], []>} : vector<8x32xf32>, vector<32x32xf32>, vector<8x32xf32> -> vector<8x32xf32>
    %c0_10 = arith.constant 0 : index
    %c0_11 = arith.constant 0 : index
    %9 = vector.load %arg6[%c0_10, %c0_11] : memref<1x32xf32, #tpu.memory_space<vmem>>, vector<1x32xf32>
    %10 = vector.broadcast %9 : vector<1x32xf32> to vector<8x32xf32>
    %11 = arith.addf %8, %10 : vector<8x32xf32>
    %c0_12 = arith.constant 0 : index
    %c0_13 = arith.constant 0 : index
    %12 = vector.load %arg7[%c0_12, %c0_13] : memref<32x32xf32, #tpu.memory_space<vmem>>, vector<32x32xf32>
    %cst_14 = arith.constant dense<0.000000e+00> : vector<8x32xf32>
    %13 = tpu.matmul %1, %12, %cst_14 {dimension_numbers = #tpu.dot_dimension_numbers<[1], [0], [0], [1], [0, 0, 1, 1], [], []>} : vector<8x32xf32>, vector<32x32xf32>, vector<8x32xf32> -> vector<8x32xf32>
    %c0_15 = arith.constant 0 : index
    %c0_16 = arith.constant 0 : index
    %14 = vector.load %arg8[%c0_15, %c0_16] : memref<1x32xf32, #tpu.memory_space<vmem>>, vector<1x32xf32>
    %15 = vector.broadcast %14 : vector<1x32xf32> to vector<8x32xf32>
    %16 = arith.addf %13, %15 : vector<8x32xf32>
    %17 = vector.extract_strided_slice %6 {offsets = [0, 0], sizes = [8, 8], strides = [1, 1]} : vector<8x32xf32> to vector<8x8xf32>
    %18 = vector.extract_strided_slice %11 {offsets = [0, 0], sizes = [8, 8], strides = [1, 1]} : vector<8x32xf32> to vector<8x8xf32>
    %19 = vector.extract_strided_slice %16 {offsets = [0, 0], sizes = [8, 8], strides = [1, 1]} : vector<8x32xf32> to vector<8x8xf32>
    %20 = tpu.transpose %18, [1, 0] : vector<8x8xf32> -> vector<8x8xf32>
    %cst_17 = arith.constant dense<0.000000e+00> : vector<8x8xf32>
    %21 = tpu.matmul %17, %20, %cst_17 {dimension_numbers = #tpu.dot_dimension_numbers<[1], [0], [0], [1], [0, 0, 1, 1], [], []>} : vector<8x8xf32>, vector<8x8xf32>, vector<8x8xf32> -> vector<8x8xf32>
    %cst_18 = arith.constant 0.353553385 : f32
    %22 = vector.broadcast %cst_18 : f32 to vector<8x8xf32>
    %23 = arith.mulf %21, %22 : vector<8x8xf32>
    %24 = tpu.iota {dimensions = array<i32: 0>} : vector<8x8xi32>
    %25 = tpu.iota {dimensions = array<i32: 1>} : vector<8x8xi32>
    %26 = arith.cmpi sle, %25, %24 : vector<8x8xi32>
    %cst_19 = arith.constant -1.000000e+09 : f32
    %27 = vector.broadcast %cst_19 : f32 to vector<8x8xf32>
    %28 = arith.select %26, %23, %27 : vector<8x8xi1>, vector<8x8xf32>
    %cst_20 = arith.constant dense<0xFF800000> : vector<8xf32>
    %29 = vector.multi_reduction <maximumf>, %28, %cst_20 [1] : vector<8x8xf32> to vector<8xf32>
    %30 = vector.shape_cast %29 : vector<8xf32> to vector<8x1xf32>
    %31 = vector.broadcast %30 : vector<8x1xf32> to vector<8x8xf32>
    %32 = arith.subf %28, %31 : vector<8x8xf32>
    %33 = math.exp %32 : vector<8x8xf32>
    %cst_21 = arith.constant dense<0.000000e+00> : vector<8xf32>
    %34 = vector.multi_reduction <add>, %33, %cst_21 [1] : vector<8x8xf32> to vector<8xf32>
    %35 = vector.shape_cast %34 : vector<8xf32> to vector<8x1xf32>
    %36 = tpu.reciprocal %35 {approx = true} : vector<8x1xf32> -> vector<8x1xf32>
    %37 = vector.broadcast %36 : vector<8x1xf32> to vector<8x8xf32>
    %38 = arith.mulf %33, %37 : vector<8x8xf32>
    %cst_22 = arith.constant dense<0.000000e+00> : vector<8x8xf32>
    %39 = tpu.matmul %38, %19, %cst_22 {dimension_numbers = #tpu.dot_dimension_numbers<[1], [0], [0], [1], [0, 0, 1, 1], [], []>} : vector<8x8xf32>, vector<8x8xf32>, vector<8x8xf32> -> vector<8x8xf32>
    %40 = vector.extract_strided_slice %6 {offsets = [0, 8], sizes = [8, 8], strides = [1, 1]} : vector<8x32xf32> to vector<8x8xf32>
    %41 = vector.extract_strided_slice %11 {offsets = [0, 8], sizes = [8, 8], strides = [1, 1]} : vector<8x32xf32> to vector<8x8xf32>
    %42 = vector.extract_strided_slice %16 {offsets = [0, 8], sizes = [8, 8], strides = [1, 1]} : vector<8x32xf32> to vector<8x8xf32>
    %43 = tpu.transpose %41, [1, 0] : vector<8x8xf32> -> vector<8x8xf32>
    %cst_23 = arith.constant dense<0.000000e+00> : vector<8x8xf32>
    %44 = tpu.matmul %40, %43, %cst_23 {dimension_numbers = #tpu.dot_dimension_numbers<[1], [0], [0], [1], [0, 0, 1, 1], [], []>} : vector<8x8xf32>, vector<8x8xf32>, vector<8x8xf32> -> vector<8x8xf32>
    %cst_24 = arith.constant 0.353553385 : f32
    %45 = vector.broadcast %cst_24 : f32 to vector<8x8xf32>
    %46 = arith.mulf %44, %45 : vector<8x8xf32>
    %47 = tpu.iota {dimensions = array<i32: 0>} : vector<8x8xi32>
    %48 = tpu.iota {dimensions = array<i32: 1>} : vector<8x8xi32>
    %49 = arith.cmpi sle, %48, %47 : vector<8x8xi32>
    %cst_25 = arith.constant -1.000000e+09 : f32
    %50 = vector.broadcast %cst_25 : f32 to vector<8x8xf32>
    %51 = arith.select %49, %46, %50 : vector<8x8xi1>, vector<8x8xf32>
    %cst_26 = arith.constant dense<0xFF800000> : vector<8xf32>
    %52 = vector.multi_reduction <maximumf>, %51, %cst_26 [1] : vector<8x8xf32> to vector<8xf32>
    %53 = vector.shape_cast %52 : vector<8xf32> to vector<8x1xf32>
    %54 = vector.broadcast %53 : vector<8x1xf32> to vector<8x8xf32>
    %55 = arith.subf %51, %54 : vector<8x8xf32>
    %56 = math.exp %55 : vector<8x8xf32>
    %cst_27 = arith.constant dense<0.000000e+00> : vector<8xf32>
    %57 = vector.multi_reduction <add>, %56, %cst_27 [1] : vector<8x8xf32> to vector<8xf32>
    %58 = vector.shape_cast %57 : vector<8xf32> to vector<8x1xf32>
    %59 = tpu.reciprocal %58 {approx = true} : vector<8x1xf32> -> vector<8x1xf32>
    %60 = vector.broadcast %59 : vector<8x1xf32> to vector<8x8xf32>
    %61 = arith.mulf %56, %60 : vector<8x8xf32>
    %cst_28 = arith.constant dense<0.000000e+00> : vector<8x8xf32>
    %62 = tpu.matmul %61, %42, %cst_28 {dimension_numbers = #tpu.dot_dimension_numbers<[1], [0], [0], [1], [0, 0, 1, 1], [], []>} : vector<8x8xf32>, vector<8x8xf32>, vector<8x8xf32> -> vector<8x8xf32>
    %63 = vector.extract_strided_slice %6 {offsets = [0, 16], sizes = [8, 8], strides = [1, 1]} : vector<8x32xf32> to vector<8x8xf32>
    %64 = vector.extract_strided_slice %11 {offsets = [0, 16], sizes = [8, 8], strides = [1, 1]} : vector<8x32xf32> to vector<8x8xf32>
    %65 = vector.extract_strided_slice %16 {offsets = [0, 16], sizes = [8, 8], strides = [1, 1]} : vector<8x32xf32> to vector<8x8xf32>
    %66 = tpu.transpose %64, [1, 0] : vector<8x8xf32> -> vector<8x8xf32>
    %cst_29 = arith.constant dense<0.000000e+00> : vector<8x8xf32>
    %67 = tpu.matmul %63, %66, %cst_29 {dimension_numbers = #tpu.dot_dimension_numbers<[1], [0], [0], [1], [0, 0, 1, 1], [], []>} : vector<8x8xf32>, vector<8x8xf32>, vector<8x8xf32> -> vector<8x8xf32>
    %cst_30 = arith.constant 0.353553385 : f32
    %68 = vector.broadcast %cst_30 : f32 to vector<8x8xf32>
    %69 = arith.mulf %67, %68 : vector<8x8xf32>
    %70 = tpu.iota {dimensions = array<i32: 0>} : vector<8x8xi32>
    %71 = tpu.iota {dimensions = array<i32: 1>} : vector<8x8xi32>
    %72 = arith.cmpi sle, %71, %70 : vector<8x8xi32>
    %cst_31 = arith.constant -1.000000e+09 : f32
    %73 = vector.broadcast %cst_31 : f32 to vector<8x8xf32>
    %74 = arith.select %72, %69, %73 : vector<8x8xi1>, vector<8x8xf32>
    %cst_32 = arith.constant dense<0xFF800000> : vector<8xf32>
    %75 = vector.multi_reduction <maximumf>, %74, %cst_32 [1] : vector<8x8xf32> to vector<8xf32>
    %76 = vector.shape_cast %75 : vector<8xf32> to vector<8x1xf32>
    %77 = vector.broadcast %76 : vector<8x1xf32> to vector<8x8xf32>
    %78 = arith.subf %74, %77 : vector<8x8xf32>
    %79 = math.exp %78 : vector<8x8xf32>
    %cst_33 = arith.constant dense<0.000000e+00> : vector<8xf32>
    %80 = vector.multi_reduction <add>, %79, %cst_33 [1] : vector<8x8xf32> to vector<8xf32>
    %81 = vector.shape_cast %80 : vector<8xf32> to vector<8x1xf32>
    %82 = tpu.reciprocal %81 {approx = true} : vector<8x1xf32> -> vector<8x1xf32>
    %83 = vector.broadcast %82 : vector<8x1xf32> to vector<8x8xf32>
    %84 = arith.mulf %79, %83 : vector<8x8xf32>
    %cst_34 = arith.constant dense<0.000000e+00> : vector<8x8xf32>
    %85 = tpu.matmul %84, %65, %cst_34 {dimension_numbers = #tpu.dot_dimension_numbers<[1], [0], [0], [1], [0, 0, 1, 1], [], []>} : vector<8x8xf32>, vector<8x8xf32>, vector<8x8xf32> -> vector<8x8xf32>
    %86 = vector.extract_strided_slice %6 {offsets = [0, 24], sizes = [8, 8], strides = [1, 1]} : vector<8x32xf32> to vector<8x8xf32>
    %87 = vector.extract_strided_slice %11 {offsets = [0, 24], sizes = [8, 8], strides = [1, 1]} : vector<8x32xf32> to vector<8x8xf32>
    %88 = vector.extract_strided_slice %16 {offsets = [0, 24], sizes = [8, 8], strides = [1, 1]} : vector<8x32xf32> to vector<8x8xf32>
    %89 = tpu.transpose %87, [1, 0] : vector<8x8xf32> -> vector<8x8xf32>
    %cst_35 = arith.constant dense<0.000000e+00> : vector<8x8xf32>
    %90 = tpu.matmul %86, %89, %cst_35 {dimension_numbers = #tpu.dot_dimension_numbers<[1], [0], [0], [1], [0, 0, 1, 1], [], []>} : vector<8x8xf32>, vector<8x8xf32>, vector<8x8xf32> -> vector<8x8xf32>
    %cst_36 = arith.constant 0.353553385 : f32
    %91 = vector.broadcast %cst_36 : f32 to vector<8x8xf32>
    %92 = arith.mulf %90, %91 : vector<8x8xf32>
    %93 = tpu.iota {dimensions = array<i32: 0>} : vector<8x8xi32>
    %94 = tpu.iota {dimensions = array<i32: 1>} : vector<8x8xi32>
    %95 = arith.cmpi sle, %94, %93 : vector<8x8xi32>
    %cst_37 = arith.constant -1.000000e+09 : f32
    %96 = vector.broadcast %cst_37 : f32 to vector<8x8xf32>
    %97 = arith.select %95, %92, %96 : vector<8x8xi1>, vector<8x8xf32>
    %cst_38 = arith.constant dense<0xFF800000> : vector<8xf32>
    %98 = vector.multi_reduction <maximumf>, %97, %cst_38 [1] : vector<8x8xf32> to vector<8xf32>
    %99 = vector.shape_cast %98 : vector<8xf32> to vector<8x1xf32>
    %100 = vector.broadcast %99 : vector<8x1xf32> to vector<8x8xf32>
    %101 = arith.subf %97, %100 : vector<8x8xf32>
    %102 = math.exp %101 : vector<8x8xf32>
    %cst_39 = arith.constant dense<0.000000e+00> : vector<8xf32>
    %103 = vector.multi_reduction <add>, %102, %cst_39 [1] : vector<8x8xf32> to vector<8xf32>
    %104 = vector.shape_cast %103 : vector<8xf32> to vector<8x1xf32>
    %105 = tpu.reciprocal %104 {approx = true} : vector<8x1xf32> -> vector<8x1xf32>
    %106 = vector.broadcast %105 : vector<8x1xf32> to vector<8x8xf32>
    %107 = arith.mulf %102, %106 : vector<8x8xf32>
    %cst_40 = arith.constant dense<0.000000e+00> : vector<8x8xf32>
    %108 = tpu.matmul %107, %88, %cst_40 {dimension_numbers = #tpu.dot_dimension_numbers<[1], [0], [0], [1], [0, 0, 1, 1], [], []>} : vector<8x8xf32>, vector<8x8xf32>, vector<8x8xf32> -> vector<8x8xf32>
    %109 = tpu.concatenate %39, %62, %85, %108 in 1 : vector<8x8xf32>, vector<8x8xf32>, vector<8x8xf32>, vector<8x8xf32> -> vector<8x32xf32>
    %c0_41 = arith.constant 0 : index
    %c0_42 = arith.constant 0 : index
    %110 = vector.load %arg9[%c0_41, %c0_42] : memref<32x32xf32, #tpu.memory_space<vmem>>, vector<32x32xf32>
    %cst_43 = arith.constant dense<0.000000e+00> : vector<8x32xf32>
    %111 = tpu.matmul %109, %110, %cst_43 {dimension_numbers = #tpu.dot_dimension_numbers<[1], [0], [0], [1], [0, 0, 1, 1], [], []>} : vector<8x32xf32>, vector<32x32xf32>, vector<8x32xf32> -> vector<8x32xf32>
    %c0_44 = arith.constant 0 : index
    %c0_45 = arith.constant 0 : index
    %112 = vector.load %arg10[%c0_44, %c0_45] : memref<1x32xf32, #tpu.memory_space<vmem>>, vector<1x32xf32>
    %113 = vector.broadcast %112 : vector<1x32xf32> to vector<8x32xf32>
    %114 = arith.addf %111, %113 : vector<8x32xf32>
    %115 = arith.addf %0, %114 : vector<8x32xf32>
    %c0_46 = arith.constant 0 : index
    %c0_47 = arith.constant 0 : index
    %116 = vector.load %arg11[%c0_46, %c0_47] : memref<1x32xf32, #tpu.memory_space<vmem>>, vector<1x32xf32>
    %c0_48 = arith.constant 0 : index
    %c0_49 = arith.constant 0 : index
    %117 = vector.load %arg12[%c0_48, %c0_49] : memref<1x32xf32, #tpu.memory_space<vmem>>, vector<1x32xf32>
    %cst_50 = arith.constant dense<0.000000e+00> : vector<8xf32>
    %118 = vector.multi_reduction <add>, %115, %cst_50 [1] : vector<8x32xf32> to vector<8xf32>
    %119 = vector.shape_cast %118 : vector<8xf32> to vector<8x1xf32>
    %cst_51 = arith.constant 3.200000e+01 : f32
    %120 = vector.broadcast %cst_51 : f32 to vector<8x1xf32>
    %121 = arith.divf %119, %120 : vector<8x1xf32>
    %122 = vector.broadcast %121 : vector<8x1xf32> to vector<8x32xf32>
    %123 = arith.subf %115, %122 : vector<8x32xf32>
    %124 = arith.mulf %123, %123 : vector<8x32xf32>
    %cst_52 = arith.constant dense<0.000000e+00> : vector<8xf32>
    %125 = vector.multi_reduction <add>, %124, %cst_52 [1] : vector<8x32xf32> to vector<8xf32>
    %126 = vector.shape_cast %125 : vector<8xf32> to vector<8x1xf32>
    %cst_53 = arith.constant 3.200000e+01 : f32
    %127 = vector.broadcast %cst_53 : f32 to vector<8x1xf32>
    %128 = arith.divf %126, %127 : vector<8x1xf32>
    %129 = vector.broadcast %121 : vector<8x1xf32> to vector<8x32xf32>
    %130 = arith.subf %115, %129 : vector<8x32xf32>
    %cst_54 = arith.constant 9.99999974E-6 : f32
    %131 = vector.broadcast %cst_54 : f32 to vector<8x1xf32>
    %132 = arith.addf %128, %131 : vector<8x1xf32>
    %133 = math.rsqrt %132 : vector<8x1xf32>
    %134 = vector.broadcast %133 : vector<8x1xf32> to vector<8x32xf32>
    %135 = arith.mulf %130, %134 : vector<8x32xf32>
    %136 = vector.broadcast %116 : vector<1x32xf32> to vector<8x32xf32>
    %137 = arith.mulf %135, %136 : vector<8x32xf32>
    %138 = vector.broadcast %117 : vector<1x32xf32> to vector<8x32xf32>
    %139 = arith.addf %137, %138 : vector<8x32xf32>
    %c0_55 = arith.constant 0 : index
    %c0_56 = arith.constant 0 : index
    %140 = vector.load %arg13[%c0_55, %c0_56] : memref<8x32xf32, #tpu.memory_space<vmem>>, vector<8x32xf32>
    tpu.vector_store %arg13[%c0_55, %c0_56], %139 {strides = array<i32>} : memref<8x32xf32, #tpu.memory_space<vmem>>, vector<8x32xf32>,
    return
  }
  func.func @transform_0(%arg0: i32) -> (i32, i32) {
    %c0_i32 = arith.constant 0 : i32
    %c0_i32_0 = arith.constant 0 : i32
    return %arg0, %c0_i32 : i32, i32
  }
  func.func @transform_1(%arg0: i32) -> (i32, i32) {
    %c0_i32 = arith.constant 0 : i32
    %c0_i32_0 = arith.constant 0 : i32
    return %arg0, %c0_i32 : i32, i32
  }
  func.func @transform_2(%arg0: i32) -> (i32, i32) {
    %c0_i32 = arith.constant 0 : i32
    %c0_i32_0 = arith.constant 0 : i32
    %c0_i32_1 = arith.constant 0 : i32
    return %c0_i32, %c0_i32_0 : i32, i32
  }
  func.func @transform_3(%arg0: i32) -> (i32, i32) {
    %c0_i32 = arith.constant 0 : i32
    %c0_i32_0 = arith.constant 0 : i32
    %c0_i32_1 = arith.constant 0 : i32
    return %c0_i32, %c0_i32_0 : i32, i32
  }
  func.func @transform_4(%arg0: i32) -> (i32, i32) {
    %c0_i32 = arith.constant 0 : i32
    %c0_i32_0 = arith.constant 0 : i32
    %c0_i32_1 = arith.constant 0 : i32
    return %c0_i32, %c0_i32_0 : i32, i32
  }
  func.func @transform_5(%arg0: i32) -> (i32, i32) {
    %c0_i32 = arith.constant 0 : i32
    %c0_i32_0 = arith.constant 0 : i32
    %c0_i32_1 = arith.constant 0 : i32
    return %c0_i32, %c0_i32_0 : i32, i32
  }
  func.func @transform_6(%arg0: i32) -> (i32, i32) {
    %c0_i32 = arith.constant 0 : i32
    %c0_i32_0 = arith.constant 0 : i32
    %c0_i32_1 = arith.constant 0 : i32
    return %c0_i32, %c0_i32_0 : i32, i32
  }
  func.func @transform_7(%arg0: i32) -> (i32, i32) {
    %c0_i32 = arith.constant 0 : i32
    %c0_i32_0 = arith.constant 0 : i32
    %c0_i32_1 = arith.constant 0 : i32
    return %c0_i32, %c0_i32_0 : i32, i32
  }
  func.func @transform_8(%arg0: i32) -> (i32, i32) {
    %c0_i32 = arith.constant 0 : i32
    %c0_i32_0 = arith.constant 0 : i32
    %c0_i32_1 = arith.constant 0 : i32
    return %c0_i32, %c0_i32_0 : i32, i32
  }
  func.func @transform_9(%arg0: i32) -> (i32, i32) {
    %c0_i32 = arith.constant 0 : i32
    %c0_i32_0 = arith.constant 0 : i32
    %c0_i32_1 = arith.constant 0 : i32
    return %c0_i32, %c0_i32_0 : i32, i32
  }
  func.func @transform_10(%arg0: i32) -> (i32, i32) {
    %c0_i32 = arith.constant 0 : i32
    %c0_i32_0 = arith.constant 0 : i32
    %c0_i32_1 = arith.constant 0 : i32
    return %c0_i32, %c0_i32_0 : i32, i32
  }
  func.func @transform_11(%arg0: i32) -> (i32, i32) {
    %c0_i32 = arith.constant 0 : i32
    %c0_i32_0 = arith.constant 0 : i32
    %c0_i32_1 = arith.constant 0 : i32
    return %c0_i32, %c0_i32_0 : i32, i32
  }
  func.func @transform_12(%arg0: i32) -> (i32, i32) {
    %c0_i32 = arith.constant 0 : i32
    %c0_i32_0 = arith.constant 0 : i32
    return %arg0, %c0_i32 : i32, i32
  }
}

</mosaic_0001>

<bundles_post_ra>
// kernel: seq2seq_forward.11
= control target key start
LH: loop header
LB: loop body
LE: loop exit
PB: predicated region body
PF: predicated region fallthrough
CT: control target
= control target key end

     0   :  { %8 = vsyncpa [#allocation3], 0  ;;  %s530_s0 = inlined_call_operand.vmem [shape: f32[16,32], index: 0, kind: input, shape index: {}]   ;;  %s531_s1 = inlined_call_operand.vmem [shape: f32[32,64], index: 1, kind: input, shape index: {}]   ;;  %s532_s2 = inlined_call_operand.vmem [shape: f32[1,64], index: 2, kind: input, shape index: {}]   ;;  %s533_s3 = inlined_call_operand.hbm [shape: f32[16,64], index: 3, kind: output, shape index: {}]  }
   0x1   :  { %10 = vsyncpa [#allocation3 + $0x1], 0  ;;  %s427_s12 = smov 0   ;;  %s429_s13 = smov 0  }
   0x2   :  { %s431_s14 = smov 0   ;;  %s433_s15 = smov 0  }
   0x3 LB: > { %s448_s16 = sadd.s32 4294967295, %s405_s15   ;;  %s288_s17 = sadd.s32 4294967294, %s405_s15   ;;  %s405_s15 = sphi %s433_s15, %s539_s15   ;;  %s401_s14 = sphi %s431_s14, %s538_s14   ;;  %s397_s13 = sphi %s429_s13, %s537_s13   ;;  %s393_s12 = sphi %s427_s12, %s536_s12  }
   0x4   : > { %s452_s18 = sadd.s32 1, %s405_s15   ;;  %s91_s19 = sadd.s32 1, %s401_s14 }
   0x5   : > { %s88_s20 = ssub.s32 %s405_s15, %s452_s18  ;;  %p101_p0 = scmp.ne.s32.totalorder %s401_s14, %s397_s13 }
   0x6   : > { %p89_p1 = scmp.eq.s32.totalorder %s88_s20, 0  ;;  %p102_p2 = scmp.eq.s32.totalorder %s448_s16, 1 }
   0x7   : > { %p107_p3 = scmp.ne.s32.totalorder %s397_s13, %s393_s12  ;;  %p108_p4 = scmp.eq.s32.totalorder %s288_s17, 1 }
   0x8   : > { %s463_s21 = scalar_select %p89_p1, %s401_s14, %s91_s19  }
   0x9   : > { %p465_p5 = por %p102_p2, %p101_p0  ;;  %p469_p6 = por %p108_p4, %p107_p3 }
   0xa   : > { %p291_p7 = scmp.ge.s32.totalorder %s405_s15, 1  ;;  %p139_p8 = scmp.lt.s32.totalorder %s405_s15, 3 }
   0xc   : > { %p140_p9 = pnand %p291_p7, %p139_p8 }
   0xd   : > { %p162_p10 = scmp.lt.s32.totalorder (!%p140_p9), %s448_s16, 1  ;;  %s159_s17 = sand.u32 (!%p140_p9), 1, %s397_s13  }
   0xe   : > { %143 = sbr.rel (%p140_p9) target bundleno = 414 (0x19e), region = 32  ;;  %s292_s19 = sshll.u32 (!%p140_p9), %s159_s17, 3 }
   0xf   : > { %s296_s20 = sshll.u32 (!%p140_p9), %s448_s16, 3  ;;  %s161_s27 = scalar_lea.vmem (!%p140_p9), [#allocation2], %s292_s19 }
  0x10   : > { %s224_s26 = scalar_lea.hbm (!%p140_p9), %s533_s3, %s296_s20  ;;  %s226_s28 = sshll.u32 (!%p140_p9), %s161_s27, 4  ;;  %s227_s28 = int_to_ptr.vmem [resolvable:$true] %s226_s28 }
  0x11   : > { %s228_s29 = sshll.u32 (!%p140_p9), %s224_s26, 4  ;;  %s363_s7 = scalar_lea.hbm (!%p140_p9), %s533_s3, 16  ;;  %s229_s29 = int_to_ptr.hbm [resolvable:$true] %s228_s29 }
  0x12   : > { %s357_s4 = sshra.s32 (!%p140_p9), %s229_s29, 4  ;;  %s358_s4 = int_to_ptr.hbm [resolvable:$true] %s357_s4 }
  0x13   : > { %v170_v0 = vld [vmem:[%s531_s1 + $0x18] sm:$0xff]  ;;  %v169_v1 = vld [vmem:[%s531_s1 + $0x10] sm:$0xff]  ;;  %v168_v2 = vld [vmem:[%s531_s1 + $0x8] sm:$0xff]  ;;  %s163_s30 = scalar_select %p162_p10, %s448_s16, 1  ;;  %vm175_vm0 = vcmask 261120   ;;  %vm199_vm1 = vcmask 523264  }
  0x14   : > { %191 = vmatpush.msra.mxu0 %v170_v0  ;;  %v167_v3 = vld [vmem:[%s531_s1] sm:$0xff]  ;;  %s359_s5 = scalar_lea.hbm %s358_s4, 8  ;;  %p364_p0 = scmp.lt.s32.totalorder %s358_s4, %s533_s3 }
  0x15   : > { %s293_s6 = sshll.u32 %s163_s30, 3  ;;  %v338_v5 = vld [vmem:[%s532_s2] ss:$0 sm:$0xff]  ;;  %s214_s30 = scalar_lea.sflag [#allocation3], %s159_s17 }
  0x16   : > { %192 = vmatpush.msra.mxu0 %v169_v1  ;;  %s165_s9 = scalar_lea.vmem %s530_s0, %s293_s6  ;;  %p360_p11 = scmp.ne.s32.totalorder %s358_s4, %s359_s5 }
  0x17   : > { %v166_v4 = vld [vmem:[%s165_s9] sm:$0xff]  ;;  %p365_p1 = scmp.lt.s32.totalorder %s363_s7, %s359_s5 }
  0x18   : > { %193 = vmatpush.msra.mxu0 %v168_v2  ;;  %p361_p12 = pnand %p360_p11, %p465_p5 }
  0x19   : > { %p366_p2 = por %p365_p1, %p364_p0 }
  0x1a   : > { %194 = vmatpush.msra.mxu0 %v167_v3  ;;  %p362_p13 = pneg %p361_p12 }
  0x1b   : > { %294 = vmatmul.msk.f32.vlgmr.msra.gmra.mxu0 %vm175_vm0, %v166_v4 }
  0x1c   : > { %p367_p3 = pnand %p366_p2, %p362_p13 }
  0x98   : > { %v196_v6 = vpop.f32.mrf.mxu0 }
  0x99   : > { %v197_v7 = vadd.f32 %v338_v5, %v196_v6 }
  0x9b   : > { %v200_v8 = vsel %vm199_vm1, %v197_v7, -inf }
  0x9c   : > { %201 = vmax.xlane.f32.xlu0 %v200_v8 }
 0x10f   : > { %v202_v9 = vpop.xlane.xlu0 %201 }
 0x110   : > { %v203_v10 = vsub.f32 %v197_v7, %v202_v9 }
 0x112   : > { %v204_v11 = vmul.f32 1.442695, %v203_v10 }
 0x114   : > { %339 = vpow2.f32 %v204_v11 }
 0x11a   : > { %v340_v12 = vpop.eup %339 }
 0x11b   : > { %v206_v13 = vsel %vm199_vm1, %v340_v12, 0.0 }
 0x11c   : > { %207 = vadd.xlane.f32.xlu0 %v206_v13 }
 0x18f   : > { %v208_v14 = vpop.xlane.xlu0 %207 }
 0x190   : > { %341 = vlog2.f32 %v208_v14 }
 0x196   : > { %v342_v15 = vpop.eup %341 }
 0x197   : > { %v210_v16 = vmul.f32 0.6931472, %v342_v15 }
 0x199   : > { %v211_v17 = vsub.f32 %v203_v10, %v210_v16 }
 0x19b   : > { %212 = vst.msk [vmem:[%s161_s27] sm:$0xff] %vm199_vm1, %v211_v17 }
 0x19c   : > { %370 = shalt.err (!%p367_p3)
}
 0x19d   : > { %299 = dma.vmem_to_hbm [thread:$0]  (%p465_p5), %s227_s28, 128, %s229_s29, %s214_s30  }
 0x19e PF: > { %p305_p4 = scmp.ge.s32.totalorder %s405_s15, 2  ;;  %s240_s10 = sand.u32 1, %s393_s12  }
 0x19f   : > { %s241_s11 = scalar_lea.sflag [#allocation3], %s240_s10 }
 0x1a0   : > { %p302_p7 = pnand %p305_p4, %p469_p6 }
 0x1a2   : > { %p303_p8 = pneg %p302_p7 }
 0x1a4   : > { %388 = dma.done.wait (%p303_p8), %s241_s11, 128  }
 0x1a5   : > { %390 = vsyncadd (%p303_p8), %s241_s11, 4294967168  ;;  %p13_p9 = scmp.ge.s32.totalorder %s452_s18, 4   ;;  %s536_s12 = smov %s397_s13 }
 0x1a6   : > { %s537_s13 = smov %s401_s14  ;;  %s538_s14 = smov %s463_s21 }
 0x1a7   : > { %s539_s15 = smov %s452_s18  ;;  %15 = sbr.rel (!%p13_p9) target bundleno = 3 (0x3), region = 67 }
 0x1ac   :  { %247 = vsyncpa [#allocation3], 1 }
 0x1ad   :  { %249 = vsyncpa [#allocation3 + $0x1], 1 }

// kernel: seq2seq_forward.7
= control target key start
LH: loop header
LB: loop body
LE: loop exit
PB: predicated region body
PF: predicated region fallthrough
CT: control target
= control target key end

     0   :  { %s515_s24 = smov 0   ;;  %s591_s0 = inlined_call_operand.vmem [shape: f32[16,32], index: 0, kind: input, shape index: {}]   ;;  %s592_s1 = inlined_call_operand.vmem [shape: f32[32,64], index: 1, kind: input, shape index: {}]   ;;  %s593_s2 = inlined_call_operand.vmem [shape: f32[1,64], index: 2, kind: input, shape index: {}]   ;;  %s594_s3 = inlined_call_operand.vmem [shape: f32[64,32], index: 3, kind: input, shape index: {}]   ;;  %s595_s4 = inlined_call_operand.vmem [shape: f32[1,32], index: 4, kind: input, shape index: {}]   ;;  %s596_s5 = inlined_call_operand.vmem [shape: f32[1,32], index: 5, kind: input, shape index: {}]   ;;  %s597_s6 = inlined_call_operand.vmem [shape: f32[1,32], index: 6, kind: input, shape index: {}]   ;;  %s598_s7 = inlined_call_operand.vmem [shape: f32[16,32], index: 7, kind: output, shape index: {}]  }
   0x1 LB: > { %s438_s25 = sadd.s32 4294967295, %s472_s24   ;;  %p442_p0 = scmp.ge.s32.totalorder %s472_s24, 1  ;;  %s472_s24 = sphi %s515_s24, %s17_s24  }
   0x2   : > { %p236_p1 = scmp.lt.s32.totalorder %s472_s24, 3 }
   0x4   : > { %p237_p2 = pnand %p442_p0, %p236_p1 }
   0x5   : > { %p266_p3 = scmp.lt.s32.totalorder (!%p237_p2), %s438_s25, 1 }
   0x6   : > { %240 = sbr.rel (%p237_p2) target bundleno = 548 (0x224), region = 48 }
   0xb   : > { %v278_v0 = vld [vmem:[%s592_s1 + $0x18] sm:$0xff]  ;;  %v277_v1 = vld [vmem:[%s592_s1 + $0x10] sm:$0xff]  ;;  %v276_v4 = vld [vmem:[%s592_s1 + $0x8] sm:$0xff]  ;;  %s600_s25 = smov (!%p266_p3, %s438_s25), 1  ;;  %vm283_vm0 = vcmask 261120   ;;  %vm320_vm1 = vcmask 523264  }
   0xc   : > { %299 = vmatpush.msra.mxu0 %v278_v0  ;;  %v315_v2 = vld [vmem:[%s594_s3 + $0x38] sm:$0xff]  ;;  %v314_v3 = vld [vmem:[%s594_s3 + $0x30] sm:$0xff]  ;;  %v313_v5 = vld [vmem:[%s594_s3 + $0x28] sm:$0xff]  ;;  %s443_s17 = sshll.u32 %s600_s25, 3  ;;  %v474_v22 = vmov 32.0  }
   0xd   : > { %332 = vmatpush.msra.mxu1 %v315_v2  ;;  %v275_v6 = vld [vmem:[%s592_s1] sm:$0xff]  ;;  %s269_s20 = scalar_lea.vmem %s591_s0, %s443_s17  ;;  %v311_v9 = vld [vmem:[%s594_s3 + $0x18] sm:$0xff]  ;;  %v310_v10 = vld [vmem:[%s594_s3 + $0x10] sm:$0xff]  ;;  %462 = vrcp.f32 %v474_v22  ;;  %s273_s21 = scalar_lea.vmem %s598_s7, %s443_s17 }
   0xe   : > { %300 = vmatpush.msra.mxu0 %v277_v1  ;;  %v312_v7 = vld [vmem:[%s594_s3 + $0x20] sm:$0xff]  ;;  %v309_v11 = vld [vmem:[%s594_s3 + $0x8] sm:$0xff] }
   0xf   : > { %333 = vmatpush.msra.mxu1 %v314_v3  ;;  %v274_v8 = vld [vmem:[%s269_s20] sm:$0xff] }
  0x10   : > { %301 = vmatpush.msra.mxu0 %v276_v4  ;;  %v308_v12 = vld [vmem:[%s594_s3] sm:$0xff] }
  0x11   : > { %334 = vmatpush.msra.mxu1 %v313_v5  ;;  %v458_v13 = vld [vmem:[%s593_s2] ss:$0 sm:$0xff] }
  0x12   : > { %302 = vmatpush.msra.mxu0 %v275_v6  ;;  %v459_v17 = vld [vmem:[%s595_s4] ss:$0 sm:$0xff] }
  0x13   : > { %445 = vmatmul.msk.f32.vlgmr.msra.gmra.mxu0 %vm283_vm0, %v274_v8  ;;  %335 = vmatpush.msra.mxu1 %v312_v7  ;;  %v463_v23 = vpop.eup %462  ;;  %v460_v43 = vld [vmem:[%s596_s5] ss:$0 sm:$0xff] }
  0x14   : > { %v351_v24 = vmul.f32 32.0, %v463_v23  ;;  %vm355_vm2 = vweird.f32 %v463_v23  ;;  %v461_v45 = vld [vmem:[%s597_s6] ss:$0 sm:$0xff] }
  0x15   : > { %336 = vmatpush.msra.mxu1 %v311_v9 }
  0x16   : > { %v352_v25 = vsub.f32 1.0, %v351_v24 }
  0x17   : > { %337 = vmatpush.msra.mxu1 %v310_v10 }
  0x18   : > { %v353_v26 = vmul.f32 %v463_v23, %v352_v25 }
  0x19   : > { %338 = vmatpush.msra.mxu1 %v309_v11 }
  0x1a   : > { %v354_v27 = vadd.f32 %v463_v23, %v353_v26 }
  0x1b   : > { %339 = vmatpush.msra.mxu1 %v308_v12 }
  0x1c   : > { %v356_v28 = vsel %vm355_vm2, %v463_v23, %v354_v27 }
  0x90   : > { %v304_v14 = vpop.f32.mrf.mxu0 }
  0x91   : > { %v305_v15 = vadd.f32 %v458_v13, %v304_v14 }
  0x93   : > { %v307_v16 = vmax.f32 %v305_v15, 0.0 }
  0x95   : > { %446 = vmatmul.msk.f32.vlgmr.msra.gmra.mxu1 %vm320_vm1, %v307_v16 }
 0x112   : > { %v341_v18 = vpop.f32.mrf.mxu1 }
 0x113   : > { %v342_v19 = vadd.f32 %v459_v17, %v341_v18 }
 0x115   : > { %v344_v20 = vadd.f32 %v342_v19, %v274_v8 }
 0x117   : > { %v347_v21 = vsel %vm283_vm0, %v344_v20, 0.0 }
 0x118   : > { %348 = vadd.xlane.f32.xlu0 %v347_v21 }
 0x18b   : > { %v349_v29 = vpop.xlane.xlu0 %348 }
 0x18c   : > { %v357_v30 = vmul.f32 %v356_v28, %v349_v29 }
 0x18e   : > { %v358_v31 = vsub.f32 %v344_v20, %v357_v30 }
 0x190   : > { %v359_v32 = vmul.f32 %v358_v31, %v358_v31 }
 0x192   : > { %v360_v33 = vsel %vm283_vm0, %v359_v32, 0.0 }
 0x193   : > { %361 = vadd.xlane.f32.xlu0 %v360_v33 }
 0x206   : > { %v362_v34 = vpop.xlane.xlu0 %361 }
 0x207   : > { %v363_v35 = vmul.f32 %v362_v34, %v356_v28 }
 0x209   : > { %v364_v36 = vadd.f32 1e-05, %v363_v35 }
 0x20b   : > { %464 = vrsqrt.f32 %v364_v36  ;;  %vm371_vm4 = vweird.f32 %v364_v36 }
 0x211   : > { %v465_v37 = vpop.eup %464 }
 0x212   : > { %v366_v38 = vmul.f32 %v465_v37, %v364_v36  ;;  %vm372_vm3 = vweird.f32 %v465_v37 }
 0x213   : > { %vm373_vm5 = vmor %vm371_vm4, %vm372_vm3 }
 0x214   : > { %v367_v39 = vmul.f32 %v465_v37, %v366_v38 }
 0x216   : > { %v368_v40 = vmul.f32 0.5, %v367_v39 }
 0x218   : > { %v369_v41 = vsub.f32 1.5, %v368_v40 }
 0x21a   : > { %v370_v42 = vmul.f32 %v465_v37, %v369_v41 }
 0x21c   : > { %v374_v44 = vsel %vm373_vm5, %v465_v37, %v370_v42 }
 0x21d   : > { %v375_v46 = vmul.f32 %v374_v44, %v358_v31 }
 0x21f   : > { %v379_v47 = vmul.f32 %v460_v43, %v375_v46 }
 0x221   : > { %v383_v48 = vadd.f32 %v461_v45, %v379_v47 }
 0x223   : > { %384 = vst.msk [vmem:[%s273_s21] sm:$0xff] %vm283_vm0, %v383_v48 }
 0x224 PF: > { %s17_s24 = sadd.s32 1, %s472_s24  }
 0x225   : > { %p14_p4 = scmp.ge.s32.totalorder %s17_s24, 4  }
 0x227   :  { %16 = sbr.rel (!%p14_p4) target bundleno = 1 (0x1), region = 78 }

// kernel: seq2seq_forward.6
= control target key start
LH: loop header
LB: loop body
LE: loop exit
PB: predicated region body
PF: predicated region fallthrough
CT: control target
= control target key end

     0   :  { %s1081_s21 = smov 0   ;;  %s1213_s0 = inlined_call_operand.vmem [shape: f32[16,32], index: 0, kind: input, shape index: {}, may-alias: {0,1}]   ;;  %s1214_s1 = inlined_call_operand.vmem [shape: f32[16,32], index: 1, kind: input, shape index: {}, may-alias: {0,1}]   ;;  %s1215_s2 = inlined_call_operand.vmem [shape: f32[32,32], index: 2, kind: input, shape index: {}]   ;;  %s1216_s3 = inlined_call_operand.vmem [shape: f32[1,32], index: 3, kind: input, shape index: {}]   ;;  %s1217_s4 = inlined_call_operand.vmem [shape: f32[32,32], index: 4, kind: input, shape index: {}]   ;;  %s1218_s5 = inlined_call_operand.vmem [shape: f32[1,32], index: 5, kind: input, shape index: {}]   ;;  %s1219_s6 = inlined_call_operand.vmem [shape: f32[32,32], index: 6, kind: input, shape index: {}]   ;;  %s1220_s7 = inlined_call_operand.vmem [shape: f32[1,32], index: 7, kind: input, shape index: {}]   ;;  %s1221_s8 = inlined_call_operand.vmem [shape: f32[32,32], index: 8, kind: input, shape index: {}]   ;;  %s1222_s9 = inlined_call_operand.vmem [shape: f32[1,32], index: 9, kind: input, shape index: {}]   ;;  %s1223_s10 = inlined_call_operand.vmem [shape: f32[1,32], index: 10, kind: input, shape index: {}]   ;;  %s1224_s11 = inlined_call_operand.vmem [shape: f32[1,32], index: 11, kind: input, shape index: {}]   ;;  %s1225_s12 = inlined_call_operand.vmem [shape: f32[16,32], index: 12, kind: output, shape index: {}]  }
   0x1 LB: > { %s934_s22 = sadd.s32 4294967295, %s1007_s21   ;;  %p938_p0 = scmp.ge.s32.totalorder %s1007_s21, 1  ;;  %s1007_s21 = sphi %s1081_s21, %s22_s21  }
   0x2   : > { %p370_p1 = scmp.lt.s32.totalorder %s1007_s21, 3 }
   0x4   : > { %p371_p2 = pnand %p938_p0, %p370_p1 }
   0x5   : > { %p414_p3 = scmp.lt.s32.totalorder (!%p371_p2), %s934_s22, 1  ;;  %s1009_s15 = smov (!%p371_p2), 104  }
   0x6   : > { %374 = sbr.rel (%p371_p2) target bundleno = 1317 (0x525), region = 68  ;;  %s1010_s16 = smov (!%p371_p2), 120  }
   0x7   : > { %s1011_s17 = smov (!%p371_p2), 112   ;;  %s1012_s30 = smov (!%p371_p2), 16  }
   0x8   : > { %s1013_s13 = smov (!%p371_p2), 8   ;;  %s1014_s14 = smov (!%p371_p2), 24  }
   0xb   : > { %v463_v0 = vld [vmem:[%s1217_s4 + $0x18] sm:$0xff]  ;;  %v462_v1 = vld [vmem:[%s1217_s4 + $0x10] sm:$0xff]  ;;  %v461_v4 = vld [vmem:[%s1217_s4 + $0x8] sm:$0xff]  ;;  %s1227_s22 = smov (!%p414_p3, %s934_s22), 1  ;;  %vm436_vm0 = vcmask 261120   ;;  %vm519_vm1 = vcmask 64512  }
   0xc   : > { %v431_v2 = vld [vmem:[%s1215_s2 + $0x18] sm:$0xff]  ;;  %483 = vmatpush.msra.mxu1 %v463_v0  ;;  %v430_v3 = vld [vmem:[%s1215_s2 + $0x10] sm:$0xff]  ;;  %v429_v5 = vld [vmem:[%s1215_s2 + $0x8] sm:$0xff]  ;;  %s1110_s19 = sshll.u32 %s1227_s22, 3  ;;  %vm793_vm2 = vcmask 130048   ;;  %vm795_vm3 = vcmask 195584  }
   0xd   : > { %452 = vmatpush.msra.mxu0 %v431_v2  ;;  %v460_v6 = vld [vmem:[%s1217_s4] sm:$0xff]  ;;  %s421_s26 = scalar_lea.vmem %s1214_s1, %s1110_s19  ;;  %s417_s29 = scalar_lea.vmem %s1213_s0, %s1110_s19  ;;  %v494_v16 = vld [vmem:[%s1219_s6 + $0x18] sm:$0xff]  ;;  %v493_v17 = vld [vmem:[%s1219_s6 + $0x10] sm:$0xff] }
   0xe   : > { %484 = vmatpush.msra.mxu1 %v462_v1  ;;  %v428_v7 = vld [vmem:[%s1215_s2] sm:$0xff]  ;;  %511 = vmatpush.msra.mxu2 %v494_v16  ;;  %v492_v18 = vld [vmem:[%s1219_s6 + $0x8] sm:$0xff] }
   0xf   : > { %453 = vmatpush.msra.mxu0 %v430_v3  ;;  %v427_v8 = vld [vmem:[%s421_s26] sm:$0xff] }
  0x10   : > { %485 = vmatpush.msra.mxu1 %v461_v4  ;;  %v1123_v9 = vld [vmem:[%s417_s29] sm:$0xff]  ;;  %512 = vmatpush.msra.mxu2 %v493_v17  ;;  %v800_v17 = vld [vmem:[%s1221_s8 + $0x18] sm:$0xff] }
  0x11   : > { %454 = vmatpush.msra.mxu0 %v429_v5  ;;  %v975_v10 = vld [vmem:[%s1218_s5] ss:$0 sm:$0xff] }
  0x12   : > { %486 = vmatpush.msra.mxu1 %v460_v6  ;;  %v976_v11 = vld [vmem:[%s1216_s3] ss:$0 sm:$0xff]  ;;  %513 = vmatpush.msra.mxu2 %v492_v18  ;;  %v799_v18 = vld [vmem:[%s1221_s8 + $0x10] sm:$0xff] }
  0x13   : > { %455 = vmatpush.msra.mxu0 %v428_v7  ;;  %943 = vmatmul.msk.f32.vlgmr.msra.gmra.mxu1 %vm436_vm0, %v427_v8  ;;  %v491_v19 = vld [vmem:[%s1219_s6] sm:$0xff] }
  0x14   : > { %942 = vmatmul.msk.f32.vlgmr.msra.gmra.mxu0 %vm436_vm0, %v1123_v9  ;;  %514 = vmatpush.msra.mxu2 %v491_v19  ;;  %v977_v29 = vld [vmem:[%s1220_s7] ss:$0 sm:$0xff]  ;;  %v798_v19 = vld [vmem:[%s1221_s8 + $0x8] sm:$0xff] }
  0x15   : > { %944 = vmatmul.msk.f32.vlgmr.msra.gmra.mxu2 %vm436_vm0, %v427_v8 }
  0x90   : > { %v488_v12 = vpop.f32.mrf.mxu1 }
  0x91   : > { %v457_v13 = vpop.f32.mrf.mxu0  ;;  %v489_v14 = vadd.f32 %v975_v10, %v488_v12 }
  0x92   : > { %v458_v15 = vadd.f32 %v976_v11, %v457_v13 }
  0x93   : > { %716 = vrot.lane.b32.xlu2 %v489_v14, %s1009_s15  ;;  %583 = vrot.lane.b32.xlu1 %v489_v14, %s1010_s16 }
  0x94   : > { %650 = vrot.lane.b32.xlu0 %v489_v14, %s1011_s17  ;;  %945 = vmatpush.xpose.msk.msra.mxu3 %vm519_vm1, %v489_v14 }
  0x97   : > { %946 = vmatmul.msk.f32.vlgmr.msra.gmra.mxu3 %vm519_vm1, %v458_v15 }
  0x98   : > { %v516_v30 = vpop.f32.mrf.mxu2 }
  0x99   : > { %v517_v31 = vadd.f32 %v977_v29, %v516_v30 }
  0x9b   : > { %714 = vrot.lane.b32.xlu2 %v458_v15, %s1009_s15  ;;  %581 = vrot.lane.b32.xlu1 %v458_v15, %s1010_s16 }
  0x9c   : > { %648 = vrot.lane.b32.xlu0 %v458_v15, %s1011_s17  ;;  %576 = vmatpush.msrb.mxu3 %v517_v31 }
  0xed   : > { %v717_v21 = vpop.permute.xlu2 %716 }
  0xf5   : > { %v715_v25 = vpop.permute.xlu2 %714 }
 0x105   : > { %v584_v20 = vpop.permute.xlu1 %583 }
 0x106   : > { %v651_v22 = vpop.permute.xlu0 %650  ;;  %948 = vmatpush.xpose.msk.msrb.mxu0 %vm519_vm1, %v584_v20  ;;  %v797_v20 = vld [vmem:[%s1221_s8] sm:$0xff] }
 0x107   : > { %951 = vmatpush.xpose.msk.msrb.mxu2 %vm519_vm1, %v651_v22 }
 0x10a   : > { %954 = vmatpush.xpose.msk.msra.mxu0 %vm519_vm1, %v717_v21 }
 0x10b   : > { %820 = vmatpush.msra.mxu2 %v800_v17 }
 0x10d   : > { %v582_v23 = vpop.permute.xlu1 %581  ;;  %821 = vmatpush.msra.mxu2 %v799_v18 }
 0x10e   : > { %v649_v24 = vpop.permute.xlu0 %648  ;;  %949 = vmatmul.msk.f32.vlgmr.msrb.gmra.mxu0 %vm519_vm1, %v582_v23 }
 0x10f   : > { %952 = vmatmul.msk.f32.vlgmr.msrb.gmra.mxu2 %vm519_vm1, %v649_v24 }
 0x110   : > { %822 = vmatpush.msra.mxu2 %v798_v19 }
 0x112   : > { %823 = vmatpush.msra.mxu2 %v797_v20 }
 0x116   : > { %955 = vmatmul.msk.f32.vlgmr.msra.gmra.mxu0 %vm519_vm1, %v715_v25 }
 0x11a   : > { %v543_v26 = vpop.f32.mrf.mxu3 }
 0x11b   : > { %v546_v27 = vmul.f32 0.35355338, %v543_v26 }
 0x11d   : > { %v547_v28 = vsel %vm519_vm1, %v546_v27, -inf }
 0x11e   : > { %548 = vmax.xlane.f32.xlu0 %v547_v28 }
 0x18b   : > { %v606_v32 = vpop.f32.mrf.mxu0 }
 0x18c   : > { %v609_v33 = vmul.f32 0.35355338, %v606_v32  ;;  %v1015_v32 = vmov 32.0  }
 0x18e   : > { %v610_v34 = vsel %vm519_vm1, %v609_v33, -inf }
 0x18f   : > { %611 = vmax.xlane.f32.xlu1 %v610_v34 }
 0x191   : > { %v549_v35 = vpop.xlane.xlu0 %548 }
 0x192   : > { %v550_v36 = vsub.f32 %v546_v27, %v549_v35  ;;  %v673_v37 = vpop.f32.mrf.mxu2  ;;  %v978_v27 = vld [vmem:[%s1222_s9] ss:$0 sm:$0xff] }
 0x193   : > { %v676_v38 = vmul.f32 0.35355338, %v673_v37  ;;  %v739_v41 = vpop.f32.mrf.mxu0 }
 0x194   : > { %v551_v39 = vmul.f32 1.442695, %v550_v36  ;;  %v742_v42 = vmul.f32 0.35355338, %v739_v41 }
 0x195   : > { %v677_v40 = vsel %vm519_vm1, %v676_v38, -inf }
 0x196   : > { %981 = vpow2.f32 %v551_v39  ;;  %678 = vmax.xlane.f32.xlu2 %v677_v40  ;;  %v743_v44 = vsel %vm519_vm1, %v742_v42, -inf }
 0x19c   : > { %v982_v43 = vpop.eup %981 }
 0x19d   : > { %v553_v45 = vsel %vm519_vm1, %v982_v43, 0.0 }
 0x19e   : > { %744 = vmax.xlane.f32.xlu2 %v743_v44  ;;  %554 = vadd.xlane.f32.xlu0 %v553_v45 }
 0x202   : > { %v612_v46 = vpop.xlane.xlu1 %611 }
 0x203   : > { %v613_v47 = vsub.f32 %v609_v33, %v612_v46 }
 0x205   : > { %v614_v48 = vmul.f32 1.442695, %v613_v47 }
 0x207   : > { %983 = vpow2.f32 %v614_v48 }
 0x209   : > { %v679_v49 = vpop.xlane.xlu2 %678 }
 0x20a   : > { %v680_v50 = vsub.f32 %v676_v38, %v679_v49 }
 0x20c   : > { %v681_v51 = vmul.f32 1.442695, %v680_v50 }
 0x20d   : > { %v984_v52 = vpop.eup %983 }
 0x20e   : > { %985 = vpow2.f32 %v681_v51  ;;  %v616_v53 = vsel %vm519_vm1, %v984_v52, 0.0 }
 0x20f   : > { %617 = vadd.xlane.f32.xlu1 %v616_v53 }
 0x211   : > { %v745_v54 = vpop.xlane.xlu2 %744  ;;  %v555_v55 = vpop.xlane.xlu0 %554 }
 0x212   : > { %v746_v56 = vsub.f32 %v742_v42, %v745_v54  ;;  %987 = vrcp.f32 %v555_v55  ;;  %v980_v54 = vld [vmem:[%s1224_s11] ss:$0 sm:$0xff] }
 0x214   : > { %v986_v57 = vpop.eup %985  ;;  %v747_v58 = vmul.f32 1.442695, %v746_v56 }
 0x215   : > { %v683_v59 = vsel %vm519_vm1, %v986_v57, 0.0 }
 0x216   : > { %989 = vpow2.f32 %v747_v58  ;;  %684 = vadd.xlane.f32.xlu2 %v683_v59 }
 0x218   : > { %v988_v60 = vpop.eup %987 }
 0x219   : > { %v557_v61 = vmul.f32 %v988_v60, %v982_v43 }
 0x21b   : > { %947 = vmatmul.msk.f32.vlgmr.msrb.gmra.mxu3 %vm519_vm1, %v557_v61 }
 0x21c   : > { %v990_v62 = vpop.eup %989 }
 0x21d   : > { %v749_v63 = vsel %vm519_vm1, %v990_v62, 0.0 }
 0x21e   : > { %750 = vadd.xlane.f32.xlu0 %v749_v63 }
 0x228   : > { %622 = vrot.lane.b32.xlu1 %v517_v31, %s1010_s16 }
 0x22e   : > { %688 = vrot.lane.b32.xlu2 %v517_v31, %s1011_s17 }
 0x232   : > { %754 = vrot.lane.b32.xlu0 %v517_v31, %s1009_s15  ;;  %s425_s15 = scalar_lea.vmem %s1225_s12, %s1110_s19 }
 0x282   : > { %v618_v1 = vpop.xlane.xlu1 %617 }
 0x289   : > { %v685_v0 = vpop.xlane.xlu2 %684 }
 0x28a   : > { %991 = vrcp.f32 %v685_v0 }
 0x28b   : > { %993 = vrcp.f32 %v618_v1 }
 0x290   : > { %v992_v2 = vpop.eup %991 }
 0x291   : > { %v687_v3 = vmul.f32 %v992_v2, %v986_v57  ;;  %v689_v4 = vpop.permute.xlu2 %688  ;;  %v994_v5 = vpop.eup %993 }
 0x292   : > { %709 = vmatpush.msra.mxu3 %v689_v4  ;;  %v751_v6 = vpop.xlane.xlu0 %750  ;;  %v620_v8 = vmul.f32 %v994_v5, %v984_v52  ;;  %v979_v52 = vld [vmem:[%s1223_s10] ss:$0 sm:$0xff] }
 0x293   : > { %953 = vmatmul.msk.f32.vlgmr.msra.gmra.mxu3 %vm519_vm1, %v687_v3  ;;  %995 = vrcp.f32 %v751_v6 }
 0x294   : > { %997 = vrcp.f32 %v1015_v32 }
 0x299   : > { %v996_v10 = vpop.eup %995 }
 0x29a   : > { %v623_v7 = vpop.permute.xlu1 %622  ;;  %v753_v11 = vmul.f32 %v996_v10, %v990_v62  ;;  %v998_v33 = vpop.eup %997 }
 0x29b   : > { %643 = vmatpush.msrb.mxu1 %v623_v7  ;;  %v835_v34 = vmul.f32 32.0, %v998_v33  ;;  %vm839_vm4 = vweird.f32 %v998_v33 }
 0x29c   : > { %950 = vmatmul.msk.f32.vlgmr.msrb.gmra.mxu1 %vm519_vm1, %v620_v8 }
 0x29d   : > { %v836_v35 = vsub.f32 1.0, %v835_v34 }
 0x29e   : > { %v578_v13 = vpop.f32.mrf.mxu3 }
 0x29f   : > { %v837_v36 = vmul.f32 %v998_v33, %v836_v35 }
 0x2a1   : > { %v838_v37 = vadd.f32 %v998_v33, %v837_v36 }
 0x2a3   : > { %v840_v38 = vsel %vm839_vm4, %v998_v33, %v838_v37 }
 0x2a4   : > { %v755_v12 = vpop.permute.xlu0 %754 }
 0x2a5   : > { %775 = vmatpush.msra.mxu1 %v755_v12 }
 0x2a6   : > { %956 = vmatmul.msk.f32.vlgmr.msra.gmra.mxu1 %vm519_vm1, %v753_v11 }
 0x316   : > { %v711_v14 = vpop.f32.mrf.mxu3 }
 0x317   : > { %785 = vrot.lane.b32.xlu0 %v711_v14, %s1012_s30 }
 0x319   : > { %v645_v15 = vpop.f32.mrf.mxu1 }
 0x31a   : > { %781 = vrot.lane.b32.xlu1 %v645_v15, %s1013_s13 }
 0x323   : > { %v777_v16 = vpop.f32.mrf.mxu1 }
 0x324   : > { %789 = vrot.lane.b32.xlu2 %v777_v16, %s1014_s14 }
 0x37e   : > { %v790_v24 = vpop.permute.xlu2 %789 }
 0x389   : > { %v786_v22 = vpop.permute.xlu0 %785 }
 0x38c   : > { %v782_v21 = vpop.permute.xlu1 %781 }
 0x38d   : > { %v792_v23 = vsel %vm519_vm1, %v578_v13, %v782_v21 }
 0x38e   : > { %v794_v25 = vsel %vm793_vm2, %v792_v23, %v786_v22 }
 0x38f   : > { %v796_v26 = vsel %vm795_vm3, %v794_v25, %v790_v24 }
 0x390   : > { %957 = vmatmul.msk.f32.vlgmr.msra.gmra.mxu2 %vm436_vm0, %v796_v26 }
 0x413   : > { %v825_v28 = vpop.f32.mrf.mxu2 }
 0x414   : > { %v826_v29 = vadd.f32 %v978_v27, %v825_v28 }
 0x416   : > { %v828_v30 = vadd.f32 %v826_v29, %v1123_v9 }
 0x418   : > { %v831_v31 = vsel %vm436_vm0, %v828_v30, 0.0 }
 0x419   : > { %832 = vadd.xlane.f32.xlu1 %v831_v31 }
 0x48c   : > { %v833_v39 = vpop.xlane.xlu1 %832 }
 0x48d   : > { %v841_v40 = vmul.f32 %v840_v38, %v833_v39 }
 0x48f   : > { %v842_v41 = vsub.f32 %v828_v30, %v841_v40 }
 0x491   : > { %v843_v42 = vmul.f32 %v842_v41, %v842_v41 }
 0x493   : > { %v844_v43 = vsel %vm436_vm0, %v843_v42, 0.0 }
 0x494   : > { %845 = vadd.xlane.f32.xlu0 %v844_v43 }
 0x507   : > { %v846_v9 = vpop.xlane.xlu0 %845 }
 0x508   : > { %v847_v44 = vmul.f32 %v846_v9, %v840_v38 }
 0x50a   : > { %v848_v45 = vadd.f32 1e-05, %v847_v44 }
 0x50c   : > { %999 = vrsqrt.f32 %v848_v45  ;;  %vm855_vm6 = vweird.f32 %v848_v45 }
 0x512   : > { %v1000_v46 = vpop.eup %999 }
 0x513   : > { %v850_v47 = vmul.f32 %v1000_v46, %v848_v45  ;;  %vm856_vm5 = vweird.f32 %v1000_v46 }
 0x514   : > { %vm857_vm7 = vmor %vm855_vm6, %vm856_vm5 }
 0x515   : > { %v851_v48 = vmul.f32 %v1000_v46, %v850_v47 }
 0x517   : > { %v852_v49 = vmul.f32 0.5, %v851_v48 }
 0x519   : > { %v853_v50 = vsub.f32 1.5, %v852_v49 }
 0x51b   : > { %v854_v51 = vmul.f32 %v1000_v46, %v853_v50 }
 0x51d   : > { %v858_v53 = vsel %vm857_vm7, %v1000_v46, %v854_v51 }
 0x51e   : > { %v859_v55 = vmul.f32 %v858_v53, %v842_v41 }
 0x520   : > { %v863_v56 = vmul.f32 %v979_v52, %v859_v55 }
 0x522   : > { %v867_v57 = vadd.f32 %v980_v54, %v863_v56 }
 0x524   : > { %868 = vst.msk [vmem:[%s425_s15] sm:$0xff] %vm436_vm0, %v867_v57 }
 0x525 PF: > { %s22_s21 = sadd.s32 1, %s1007_s21  }
 0x526   : > { %p19_p4 = scmp.ge.s32.totalorder %s22_s21, 4  }
 0x528   :  { %21 = sbr.rel (!%p19_p4) target bundleno = 1 (0x1), region = 101 }

// kernel: seq2seq_forward.8
= control target key start
LH: loop header
LB: loop body
LE: loop exit
PB: predicated region body
PF: predicated region fallthrough
CT: control target
= control target key end

     0   :  { %s1090_s21 = smov 0   ;;  %s1226_s0 = inlined_call_operand.vmem [shape: f32[16,32], index: 0, kind: input, shape index: {}, may-alias: {0,1}]   ;;  %s1227_s1 = inlined_call_operand.vmem [shape: f32[16,32], index: 1, kind: input, shape index: {}, may-alias: {0,1}]   ;;  %s1228_s2 = inlined_call_operand.vmem [shape: f32[32,32], index: 2, kind: input, shape index: {}]   ;;  %s1229_s3 = inlined_call_operand.vmem [shape: f32[1,32], index: 3, kind: input, shape index: {}]   ;;  %s1230_s4 = inlined_call_operand.vmem [shape: f32[32,32], index: 4, kind: input, shape index: {}]   ;;  %s1231_s5 = inlined_call_operand.vmem [shape: f32[1,32], index: 5, kind: input, shape index: {}]   ;;  %s1232_s6 = inlined_call_operand.vmem [shape: f32[32,32], index: 6, kind: input, shape index: {}]   ;;  %s1233_s7 = inlined_call_operand.vmem [shape: f32[1,32], index: 7, kind: input, shape index: {}]   ;;  %s1234_s8 = inlined_call_operand.vmem [shape: f32[32,32], index: 8, kind: input, shape index: {}]   ;;  %s1235_s9 = inlined_call_operand.vmem [shape: f32[1,32], index: 9, kind: input, shape index: {}]   ;;  %s1236_s10 = inlined_call_operand.vmem [shape: f32[1,32], index: 10, kind: input, shape index: {}]   ;;  %s1237_s11 = inlined_call_operand.vmem [shape: f32[1,32], index: 11, kind: input, shape index: {}]   ;;  %s1238_s12 = inlined_call_operand.vmem [shape: f32[16,32], index: 12, kind: output, shape index: {}]  }
   0x1 LB: > { %s943_s22 = sadd.s32 4294967295, %s1016_s21   ;;  %p947_p0 = scmp.ge.s32.totalorder %s1016_s21, 1  ;;  %s1016_s21 = sphi %s1090_s21, %s22_s21  }
   0x2   : > { %p370_p1 = scmp.lt.s32.totalorder %s1016_s21, 3 }
   0x4   : > { %p371_p2 = pnand %p947_p0, %p370_p1 }
   0x5   : > { %p414_p3 = scmp.lt.s32.totalorder (!%p371_p2), %s943_s22, 1  ;;  %s1018_s15 = smov (!%p371_p2), 104  }
   0x6   : > { %374 = sbr.rel (%p371_p2) target bundleno = 1318 (0x526), region = 68  ;;  %s1019_s16 = smov (!%p371_p2), 120  }
   0x7   : > { %s1020_s17 = smov (!%p371_p2), 112   ;;  %s1021_s30 = smov (!%p371_p2), 16  }
   0x8   : > { %s1022_s13 = smov (!%p371_p2), 8   ;;  %s1023_s14 = smov (!%p371_p2), 24  }
   0xb   : > { %v463_v0 = vld [vmem:[%s1230_s4 + $0x18] sm:$0xff]  ;;  %v462_v1 = vld [vmem:[%s1230_s4 + $0x10] sm:$0xff]  ;;  %v461_v4 = vld [vmem:[%s1230_s4 + $0x8] sm:$0xff]  ;;  %s1240_s22 = smov (!%p414_p3, %s943_s22), 1  ;;  %vm436_vm0 = vcmask 261120   ;;  %vm519_vm1 = vcmask 64512   ;;  %v547_v25 = vlaneseq }
   0xc   : > { %v431_v2 = vld [vmem:[%s1228_s2 + $0x18] sm:$0xff]  ;;  %483 = vmatpush.msra.mxu1 %v463_v0  ;;  %v430_v3 = vld [vmem:[%s1228_s2 + $0x10] sm:$0xff]  ;;  %v429_v5 = vld [vmem:[%s1228_s2 + $0x8] sm:$0xff]  ;;  %s1119_s19 = sshll.u32 %s1240_s22, 3  ;;  %vm802_vm3 = vcmask 130048   ;;  %vm804_vm4 = vcmask 195584  }
   0xd   : > { %452 = vmatpush.msra.mxu0 %v431_v2  ;;  %v460_v6 = vld [vmem:[%s1230_s4] sm:$0xff]  ;;  %s421_s26 = scalar_lea.vmem %s1227_s1, %s1119_s19  ;;  %s417_s29 = scalar_lea.vmem %s1226_s0, %s1119_s19  ;;  %v494_v16 = vld [vmem:[%s1232_s6 + $0x18] sm:$0xff]  ;;  %v493_v17 = vld [vmem:[%s1232_s6 + $0x10] sm:$0xff]  ;;  %v548_v27 = vshrl.u32 %v547_v25, 7  ;;  %v550_v28 = vand.u32 127, %v547_v25 }
   0xe   : > { %484 = vmatpush.msra.mxu1 %v462_v1  ;;  %v428_v7 = vld [vmem:[%s1228_s2] sm:$0xff]  ;;  %511 = vmatpush.msra.mxu2 %v494_v16  ;;  %v492_v18 = vld [vmem:[%s1232_s6 + $0x8] sm:$0xff]  ;;  %v808_v25 = vld [vmem:[%s1234_s8 + $0x10] sm:$0xff] }
   0xf   : > { %453 = vmatpush.msra.mxu0 %v430_v3  ;;  %v427_v8 = vld [vmem:[%s421_s26] sm:$0xff]  ;;  %vm551_vm2 = vcmp.le.s32.totalorder %v550_v28, %v548_v27 }
  0x10   : > { %485 = vmatpush.msra.mxu1 %v461_v4  ;;  %v1132_v9 = vld [vmem:[%s417_s29] sm:$0xff]  ;;  %512 = vmatpush.msra.mxu2 %v493_v17 }
  0x11   : > { %454 = vmatpush.msra.mxu0 %v429_v5  ;;  %v984_v10 = vld [vmem:[%s1231_s5] ss:$0 sm:$0xff] }
  0x12   : > { %486 = vmatpush.msra.mxu1 %v460_v6  ;;  %v985_v11 = vld [vmem:[%s1229_s3] ss:$0 sm:$0xff]  ;;  %513 = vmatpush.msra.mxu2 %v492_v18 }
  0x13   : > { %455 = vmatpush.msra.mxu0 %v428_v7  ;;  %952 = vmatmul.msk.f32.vlgmr.msra.gmra.mxu1 %vm436_vm0, %v427_v8  ;;  %v491_v19 = vld [vmem:[%s1232_s6] sm:$0xff] }
  0x14   : > { %951 = vmatmul.msk.f32.vlgmr.msra.gmra.mxu0 %vm436_vm0, %v1132_v9  ;;  %514 = vmatpush.msra.mxu2 %v491_v19  ;;  %v986_v33 = vld [vmem:[%s1233_s7] ss:$0 sm:$0xff] }
  0x15   : > { %953 = vmatmul.msk.f32.vlgmr.msra.gmra.mxu2 %vm436_vm0, %v427_v8  ;;  %v806_v27 = vld [vmem:[%s1234_s8] sm:$0xff] }
  0x90   : > { %v488_v12 = vpop.f32.mrf.mxu1 }
  0x91   : > { %v457_v13 = vpop.f32.mrf.mxu0  ;;  %v489_v14 = vadd.f32 %v984_v10, %v488_v12 }
  0x92   : > { %v458_v15 = vadd.f32 %v985_v11, %v457_v13 }
  0x93   : > { %724 = vrot.lane.b32.xlu2 %v489_v14, %s1018_s15  ;;  %589 = vrot.lane.b32.xlu1 %v489_v14, %s1019_s16 }
  0x94   : > { %657 = vrot.lane.b32.xlu0 %v489_v14, %s1020_s17  ;;  %954 = vmatpush.xpose.msk.msra.mxu3 %vm519_vm1, %v489_v14 }
  0x97   : > { %955 = vmatmul.msk.f32.vlgmr.msra.gmra.mxu3 %vm519_vm1, %v458_v15 }
  0x98   : > { %v516_v34 = vpop.f32.mrf.mxu2 }
  0x99   : > { %v517_v35 = vadd.f32 %v986_v33, %v516_v34  ;;  %v987_v34 = vld [vmem:[%s1235_s9] ss:$0 sm:$0xff] }
  0x9b   : > { %722 = vrot.lane.b32.xlu2 %v458_v15, %s1018_s15  ;;  %587 = vrot.lane.b32.xlu1 %v458_v15, %s1019_s16 }
  0x9c   : > { %655 = vrot.lane.b32.xlu0 %v458_v15, %s1020_s17  ;;  %582 = vmatpush.msrb.mxu3 %v517_v35 }
  0xed   : > { %v725_v21 = vpop.permute.xlu2 %724 }
  0xf5   : > { %v723_v26 = vpop.permute.xlu2 %722 }
 0x105   : > { %v590_v20 = vpop.permute.xlu1 %589 }
 0x106   : > { %v658_v22 = vpop.permute.xlu0 %657  ;;  %957 = vmatpush.xpose.msk.msrb.mxu0 %vm519_vm1, %v590_v20 }
 0x107   : > { %960 = vmatpush.xpose.msk.msrb.mxu2 %vm519_vm1, %v658_v22 }
 0x10a   : > { %963 = vmatpush.xpose.msk.msra.mxu0 %vm519_vm1, %v725_v21 }
 0x10d   : > { %v588_v23 = vpop.permute.xlu1 %587 }
 0x10e   : > { %v656_v24 = vpop.permute.xlu0 %655  ;;  %958 = vmatmul.msk.f32.vlgmr.msrb.gmra.mxu0 %vm519_vm1, %v588_v23 }
 0x10f   : > { %961 = vmatmul.msk.f32.vlgmr.msrb.gmra.mxu2 %vm519_vm1, %v656_v24  ;;  %v809_v24 = vld [vmem:[%s1234_s8 + $0x18] sm:$0xff] }
 0x110   : > { %829 = vmatpush.msra.mxu2 %v809_v24 }
 0x112   : > { %830 = vmatpush.msra.mxu2 %v808_v25 }
 0x116   : > { %964 = vmatmul.msk.f32.vlgmr.msra.gmra.mxu0 %vm519_vm1, %v723_v26  ;;  %v807_v26 = vld [vmem:[%s1234_s8 + $0x8] sm:$0xff] }
 0x117   : > { %831 = vmatpush.msra.mxu2 %v807_v26 }
 0x119   : > { %832 = vmatpush.msra.mxu2 %v806_v27 }
 0x11a   : > { %v543_v29 = vpop.f32.mrf.mxu3 }
 0x11b   : > { %v546_v30 = vmul.f32 0.35355338, %v543_v29 }
 0x11d   : > { %v552_v31 = vsel %vm551_vm2, %v546_v30, -1e+09 }
 0x11e   : > { %v553_v32 = vsel %vm519_vm1, %v552_v31, -inf }
 0x11f   : > { %554 = vmax.xlane.f32.xlu0 %v553_v32 }
 0x18b   : > { %v612_v36 = vpop.f32.mrf.mxu0 }
 0x18c   : > { %v615_v37 = vmul.f32 0.35355338, %v612_v36 }
 0x18e   : > { %v616_v38 = vsel %vm551_vm2, %v615_v37, -1e+09 }
 0x18f   : > { %v617_v39 = vsel %vm519_vm1, %v616_v38, -inf }
 0x190   : > { %618 = vmax.xlane.f32.xlu1 %v617_v39  ;;  %v1024_v39 = vmov 32.0  }
 0x192   : > { %v680_v40 = vpop.f32.mrf.mxu2  ;;  %v555_v41 = vpop.xlane.xlu0 %554 }
 0x193   : > { %v683_v42 = vmul.f32 0.35355338, %v680_v40  ;;  %v556_v43 = vsub.f32 %v552_v31, %v555_v41  ;;  %v747_v44 = vpop.f32.mrf.mxu0 }
 0x194   : > { %v750_v48 = vmul.f32 0.35355338, %v747_v44 }
 0x195   : > { %v557_v45 = vmul.f32 1.442695, %v556_v43  ;;  %v684_v46 = vsel %vm551_vm2, %v683_v42, -1e+09 }
 0x196   : > { %v685_v47 = vsel %vm519_vm1, %v684_v46, -inf  ;;  %v751_v49 = vsel %vm551_vm2, %v750_v48, -1e+09 }
 0x197   : > { %990 = vpow2.f32 %v557_v45  ;;  %686 = vmax.xlane.f32.xlu2 %v685_v47  ;;  %v752_v51 = vsel %vm519_vm1, %v751_v49, -inf }
 0x19d   : > { %v991_v50 = vpop.eup %990 }
 0x19e   : > { %v559_v52 = vsel %vm519_vm1, %v991_v50, 0.0 }
 0x19f   : > { %753 = vmax.xlane.f32.xlu2 %v752_v51  ;;  %560 = vadd.xlane.f32.xlu0 %v559_v52 }
 0x203   : > { %v619_v53 = vpop.xlane.xlu1 %618 }
 0x204   : > { %v620_v54 = vsub.f32 %v616_v38, %v619_v53 }
 0x206   : > { %v621_v55 = vmul.f32 1.442695, %v620_v54 }
 0x208   : > { %992 = vpow2.f32 %v621_v55 }
 0x20a   : > { %v687_v56 = vpop.xlane.xlu2 %686 }
 0x20b   : > { %v688_v57 = vsub.f32 %v684_v46, %v687_v56 }
 0x20d   : > { %v689_v58 = vmul.f32 1.442695, %v688_v57 }
 0x20e   : > { %v993_v59 = vpop.eup %992 }
 0x20f   : > { %994 = vpow2.f32 %v689_v58  ;;  %v623_v60 = vsel %vm519_vm1, %v993_v59, 0.0 }
 0x210   : > { %624 = vadd.xlane.f32.xlu1 %v623_v60 }
 0x212   : > { %v754_v61 = vpop.xlane.xlu2 %753  ;;  %v561_v62 = vpop.xlane.xlu0 %560 }
 0x213   : > { %v755_v63 = vsub.f32 %v751_v49, %v754_v61  ;;  %996 = vrcp.f32 %v561_v62  ;;  %v989_v61 = vld [vmem:[%s1237_s11] ss:$0 sm:$0xff] }
 0x215   : > { %v995_v0 = vpop.eup %994  ;;  %v756_v1 = vmul.f32 1.442695, %v755_v63 }
 0x216   : > { %v691_v2 = vsel %vm519_vm1, %v995_v0, 0.0 }
 0x217   : > { %998 = vpow2.f32 %v756_v1  ;;  %692 = vadd.xlane.f32.xlu2 %v691_v2 }
 0x219   : > { %v997_v3 = vpop.eup %996 }
 0x21a   : > { %v563_v4 = vmul.f32 %v997_v3, %v991_v50 }
 0x21c   : > { %956 = vmatmul.msk.f32.vlgmr.msrb.gmra.mxu3 %vm519_vm1, %v563_v4 }
 0x21d   : > { %v999_v5 = vpop.eup %998 }
 0x21e   : > { %v758_v6 = vsel %vm519_vm1, %v999_v5, 0.0 }
 0x21f   : > { %759 = vadd.xlane.f32.xlu0 %v758_v6 }
 0x229   : > { %629 = vrot.lane.b32.xlu1 %v517_v35, %s1019_s16 }
 0x22f   : > { %696 = vrot.lane.b32.xlu2 %v517_v35, %s1020_s17 }
 0x233   : > { %763 = vrot.lane.b32.xlu0 %v517_v35, %s1018_s15  ;;  %s425_s15 = scalar_lea.vmem %s1238_s12, %s1119_s19 }
 0x283   : > { %v625_v8 = vpop.xlane.xlu1 %624 }
 0x28a   : > { %v693_v7 = vpop.xlane.xlu2 %692 }
 0x28b   : > { %1000 = vrcp.f32 %v693_v7 }
 0x28c   : > { %1002 = vrcp.f32 %v625_v8 }
 0x291   : > { %v1001_v10 = vpop.eup %1000 }
 0x292   : > { %v695_v11 = vmul.f32 %v1001_v10, %v995_v0  ;;  %v697_v12 = vpop.permute.xlu2 %696  ;;  %v1003_v13 = vpop.eup %1002 }
 0x293   : > { %717 = vmatpush.msra.mxu3 %v697_v12  ;;  %v760_v14 = vpop.xlane.xlu0 %759  ;;  %v627_v16 = vmul.f32 %v1003_v13, %v993_v59  ;;  %v988_v59 = vld [vmem:[%s1236_s10] ss:$0 sm:$0xff] }
 0x294   : > { %962 = vmatmul.msk.f32.vlgmr.msra.gmra.mxu3 %vm519_vm1, %v695_v11  ;;  %1004 = vrcp.f32 %v760_v14 }
 0x295   : > { %1006 = vrcp.f32 %v1024_v39 }
 0x29a   : > { %v1005_v17 = vpop.eup %1004 }
 0x29b   : > { %v630_v15 = vpop.permute.xlu1 %629  ;;  %v762_v18 = vmul.f32 %v1005_v17, %v999_v5  ;;  %v1007_v40 = vpop.eup %1006 }
 0x29c   : > { %650 = vmatpush.msrb.mxu1 %v630_v15  ;;  %v844_v41 = vmul.f32 32.0, %v1007_v40  ;;  %vm848_vm5 = vweird.f32 %v1007_v40 }
 0x29d   : > { %959 = vmatmul.msk.f32.vlgmr.msrb.gmra.mxu1 %vm519_vm1, %v627_v16 }
 0x29e   : > { %v845_v42 = vsub.f32 1.0, %v844_v41 }
 0x29f   : > { %v584_v20 = vpop.f32.mrf.mxu3 }
 0x2a0   : > { %v846_v43 = vmul.f32 %v1007_v40, %v845_v42 }
 0x2a2   : > { %v847_v44 = vadd.f32 %v1007_v40, %v846_v43 }
 0x2a4   : > { %v849_v45 = vsel %vm848_vm5, %v1007_v40, %v847_v44 }
 0x2a5   : > { %v764_v19 = vpop.permute.xlu0 %763 }
 0x2a6   : > { %784 = vmatpush.msra.mxu1 %v764_v19 }
 0x2a7   : > { %965 = vmatmul.msk.f32.vlgmr.msra.gmra.mxu1 %vm519_vm1, %v762_v18 }
 0x317   : > { %v719_v21 = vpop.f32.mrf.mxu3 }
 0x318   : > { %794 = vrot.lane.b32.xlu0 %v719_v21, %s1021_s30 }
 0x31a   : > { %v652_v22 = vpop.f32.mrf.mxu1 }
 0x31b   : > { %790 = vrot.lane.b32.xlu1 %v652_v22, %s1022_s13 }
 0x324   : > { %v786_v23 = vpop.f32.mrf.mxu1 }
 0x325   : > { %798 = vrot.lane.b32.xlu2 %v786_v23, %s1023_s14 }
 0x37f   : > { %v799_v31 = vpop.permute.xlu2 %798 }
 0x38a   : > { %v795_v29 = vpop.permute.xlu0 %794 }
 0x38d   : > { %v791_v28 = vpop.permute.xlu1 %790 }
 0x38e   : > { %v801_v30 = vsel %vm519_vm1, %v584_v20, %v791_v28 }
 0x38f   : > { %v803_v32 = vsel %vm802_vm3, %v801_v30, %v795_v29 }
 0x390   : > { %v805_v33 = vsel %vm804_vm4, %v803_v32, %v799_v31 }
 0x391   : > { %966 = vmatmul.msk.f32.vlgmr.msra.gmra.mxu2 %vm436_vm0, %v805_v33 }
 0x414   : > { %v834_v35 = vpop.f32.mrf.mxu2 }
 0x415   : > { %v835_v36 = vadd.f32 %v987_v34, %v834_v35 }
 0x417   : > { %v837_v37 = vadd.f32 %v835_v36, %v1132_v9 }
 0x419   : > { %v840_v38 = vsel %vm436_vm0, %v837_v37, 0.0 }
 0x41a   : > { %841 = vadd.xlane.f32.xlu1 %v840_v38 }
 0x48d   : > { %v842_v46 = vpop.xlane.xlu1 %841 }
 0x48e   : > { %v850_v47 = vmul.f32 %v849_v45, %v842_v46 }
 0x490   : > { %v851_v48 = vsub.f32 %v837_v37, %v850_v47 }
 0x492   : > { %v852_v49 = vmul.f32 %v851_v48, %v851_v48 }
 0x494   : > { %v853_v50 = vsel %vm436_vm0, %v852_v49, 0.0 }
 0x495   : > { %854 = vadd.xlane.f32.xlu0 %v853_v50 }
 0x508   : > { %v855_v9 = vpop.xlane.xlu0 %854 }
 0x509   : > { %v856_v51 = vmul.f32 %v855_v9, %v849_v45 }
 0x50b   : > { %v857_v52 = vadd.f32 1e-05, %v856_v51 }
 0x50d   : > { %1008 = vrsqrt.f32 %v857_v52  ;;  %vm864_vm7 = vweird.f32 %v857_v52 }
 0x513   : > { %v1009_v53 = vpop.eup %1008 }
 0x514   : > { %v859_v54 = vmul.f32 %v1009_v53, %v857_v52  ;;  %vm865_vm6 = vweird.f32 %v1009_v53 }
 0x515   : > { %vm866_vm8 = vmor %vm864_vm7, %vm865_vm6 }
 0x516   : > { %v860_v55 = vmul.f32 %v1009_v53, %v859_v54 }
 0x518   : > { %v861_v56 = vmul.f32 0.5, %v860_v55 }
 0x51a   : > { %v862_v57 = vsub.f32 1.5, %v861_v56 }
 0x51c   : > { %v863_v58 = vmul.f32 %v1009_v53, %v862_v57 }
 0x51e   : > { %v867_v60 = vsel %vm866_vm8, %v1009_v53, %v863_v58 }
 0x51f   : > { %v868_v62 = vmul.f32 %v867_v60, %v851_v48 }
 0x521   : > { %v872_v63 = vmul.f32 %v988_v59, %v868_v62 }
 0x523   : > { %v876_v0 = vadd.f32 %v989_v61, %v872_v63 }
 0x525   : > { %877 = vst.msk [vmem:[%s425_s15] sm:$0xff] %vm436_vm0, %v876_v0 }
 0x526 PF: > { %s22_s21 = sadd.s32 1, %s1016_s21  }
 0x527   : > { %p19_p4 = scmp.ge.s32.totalorder %s22_s21, 4  }
 0x529   :  { %21 = sbr.rel (!%p19_p4) target bundleno = 1 (0x1), region = 101 }

</bundles_post_ra>
